<compile_context>
chip_gen: v7x
topology: tpu7x:2x2x1
jax: 0.10.0
libtpu: 0.0.40
codegen_flags: <defaults>
</compile_context>

<pallas_src>
import functools
import math

import jax
import jax.numpy as jnp
import numpy as np
from jax import lax
from jax.experimental import pallas as pl
from jax.experimental.pallas import tpu as pltpu


def _round_up(x, m):
    return ((x + m - 1) // m) * m


# --------------------------------------------------------------------------
# Hardware / budget helpers
# --------------------------------------------------------------------------
def _tpu_budget():
    """Best-effort query of per-core VMEM capacity and TensorCores per chip."""
    vmem_cap = 64 << 20          # conservative default = v7x per-core VMEM
    cores = 1
    try:
        info = pltpu.get_tpu_info()
        vmem_cap = int(getattr(info, "vmem_capacity_bytes", vmem_cap))
    except Exception:
        pass
    try:
        kind = jax.devices()[0].device_kind.lower()
        if "7" in kind:          # v7x exposes two TensorCores per chip
            cores = 2
    except Exception:
        pass
    vmem_limit = min(vmem_cap * 3 // 4, 96 << 20)
    if cores > 1:                # v7x: 64 MiB per TensorCore; stay well under
        vmem_limit = min(vmem_limit, 48 << 20)
    vmem_limit = max(vmem_limit, 32 << 20)
    return vmem_limit, cores


def _weight_spec(shape, single_buffer):
    """Constant-index weight spec (stays VMEM-resident across the grid).

    single_buffer=True additionally requests buffer_count=1: the weights never
    change across the grid, so double buffering them only wastes VMEM.
    """
    if single_buffer:
        return pl.BlockSpec(shape, lambda *_: (0,) * len(shape),
                            pipeline_mode=pl.Buffered(buffer_count=1))
    return pl.BlockSpec(shape, lambda *_: (0,) * len(shape))


def _run_with_weight_fallback(build, *args):
    """Run build(True)(*args); if this JAX/Mosaic rejects single-buffered
    weights (pl.Buffered(1)), retry with default double buffering."""
    try:
        return jax.block_until_ready(build(True)(*args))
    except Exception:
        return jax.block_until_ready(build(False)(*args))


# --------------------------------------------------------------------------
# Kernel bodies
# --------------------------------------------------------------------------
def _pp_fused_kernel(x_ref, wcq_ref, wv_ref, o_ref, y_s, q_s, *,
                     num_patches, p_pad, approx_recip, compute_dtype):
    """Single-pass kernel: one batch block, whole spatial extent resident."""
    Nb, L, C = x_ref.shape
    cdt = compute_dtype
    rows = Nb * L
    inv_scale = 1.0 / math.sqrt(C)
    neg_big = jnp.float32(-1e30)

    # ---- fused classifier + query projection over every row of the block ----
    x2d = x_ref[...].reshape(rows, C).astype(cdt)      # cast on the VMEM tile
    proj = jnp.dot(x2d, wcq_ref[...], preferred_element_type=jnp.float32)

    # Classifier softmax over the lane-dense (padded-to-128) patch axis.  Pad
    # columns come from zero weight columns (logit exactly 0) and must be
    # masked before the softmax; afterwards their y weight is exactly 0.
    pad_mask = lax.broadcasted_iota(jnp.int32, (rows, p_pad), 1) < num_patches
    logits = jnp.where(pad_mask, proj[:, :p_pad], neg_big)
    logits = logits - jnp.max(logits, axis=-1, keepdims=True)
    e = jnp.exp(logits)
    y2d = e * pl.reciprocal(jnp.sum(e, axis=-1, keepdims=True),
                            approx=approx_recip)                   # (rows, p_pad)

    # Stash compute-dtype copies in scratch: this ends the live range of the
    # f32 projection before the per-batch loop (bounds vreg pressure).
    y_s[...] = y2d.reshape(Nb, L, p_pad).astype(cdt)
    q_s[...] = proj[:, p_pad:p_pad + C].reshape(Nb, L, C).astype(cdt)

    loop_mask = lax.broadcasted_iota(jnp.int32, (L, p_pad), 1) < num_patches

    def per_batch(b, carry):
        y_b = y_s[b]                                   # (L, p_pad)
        q_b = q_s[b]                                   # (L, C)
        # keys[p, c] = sum_l y[l, p] * q[l, c]   (pad rows are exactly 0)
        keys = lax.dot_general(y_b, q_b, (((0,), (0,)), ((), ())),
                               preferred_element_type=jnp.float32)  # (p_pad, C)
        values = jnp.dot(keys.astype(cdt), wv_ref[...],
                         preferred_element_type=jnp.float32)        # (p_pad, C)
        # sim[l, p] = <q_l, keys_p> / sqrt(C): fold the scale into the small
        # (p_pad, C) operand instead of an extra (L, p_pad) multiply.
        keys_s = (keys * inv_scale).astype(cdt)
        sim = lax.dot_general(q_b, keys_s, (((1,), (1,)), ((), ())),
                              preferred_element_type=jnp.float32)   # (L, p_pad)
        sim = jnp.where(loop_mask, sim, neg_big)       # pad cols are 0 -> mask
        sim = sim - jnp.max(sim, axis=-1, keepdims=True)
        se = jnp.exp(sim)
        attn = se * pl.reciprocal(jnp.sum(se, axis=-1, keepdims=True),
                                  approx=approx_recip)
        out_b = jnp.dot(attn.astype(cdt), values.astype(cdt),
                        preferred_element_type=jnp.float32)         # (L, C)
        o_ref[b] = out_b.astype(o_ref.dtype)
        return carry

    lax.fori_loop(0, Nb, per_batch, 0)


def _pp_pass1_kernel(x_ref, wcq_ref, wv_ref, q_ref, keys_ref, vals_ref,
                     keys_acc, *, num_patches, p_pad, approx_recip,
                     compute_dtype):
    """L-tiled pass 1: projection + classifier softmax; accumulate keys over L."""
    cdt = compute_dtype
    _, tl, C = x_ref.shape
    inv_scale = 1.0 / math.sqrt(C)
    neg_big = jnp.float32(-1e30)
    l = pl.program_id(1)

    @pl.when(l == 0)
    def _init():
        keys_acc[...] = jnp.zeros_like(keys_acc)

    x2d = x_ref[0].astype(cdt)                                      # (tl, C)
    proj = jnp.dot(x2d, wcq_ref[...], preferred_element_type=jnp.float32)
    pad_mask = lax.broadcasted_iota(jnp.int32, (tl, p_pad), 1) < num_patches
    logits = jnp.where(pad_mask, proj[:, :p_pad], neg_big)
    logits = logits - jnp.max(logits, axis=-1, keepdims=True)
    e = jnp.exp(logits)
    y = e * pl.reciprocal(jnp.sum(e, axis=-1, keepdims=True),
                          approx=approx_recip)                      # (tl, p_pad)
    q = proj[:, p_pad:p_pad + C]                                    # (tl, C)
    q_ref[0] = q.astype(q_ref.dtype)

    keys_acc[...] += lax.dot_general(y.astype(cdt), q.astype(cdt),
                                     (((0,), (0,)), ((), ())),
                                     preferred_element_type=jnp.float32)

    @pl.when(l == pl.num_programs(1) - 1)
    def _fin():
        keys = keys_acc[...]
        vals = jnp.dot(keys.astype(cdt), wv_ref[...],
                       preferred_element_type=jnp.float32)
        keys_ref[0] = (keys * inv_scale).astype(keys_ref.dtype)     # pre-scaled
        vals_ref[0] = vals.astype(vals_ref.dtype)


def _pp_pass2_kernel(q_ref, keys_ref, vals_ref, o_ref, *, num_patches,
                     approx_recip, compute_dtype):
    """L-tiled pass 2: sim/attn softmax and output using resident keys/values."""
    cdt = compute_dtype
    _, tl, C = q_ref.shape
    p_pad = keys_ref.shape[1]
    neg_big = jnp.float32(-1e30)

    q = q_ref[0].astype(cdt)                                        # (tl, C)
    keys_s = keys_ref[0].astype(cdt)                                # (p_pad, C)
    sim = lax.dot_general(q, keys_s, (((1,), (1,)), ((), ())),
                          preferred_element_type=jnp.float32)       # (tl, p_pad)
    pad_mask = lax.broadcasted_iota(jnp.int32, (tl, p_pad), 1) < num_patches
    sim = jnp.where(pad_mask, sim, neg_big)
    sim = sim - jnp.max(sim, axis=-1, keepdims=True)
    e = jnp.exp(sim)
    attn = e * pl.reciprocal(jnp.sum(e, axis=-1, keepdims=True),
                             approx=approx_recip)
    out = jnp.dot(attn.astype(cdt), vals_ref[0].astype(cdt),
                  preferred_element_type=jnp.float32)               # (tl, C)
    o_ref[0] = out.astype(o_ref.dtype)


# --------------------------------------------------------------------------
# pallas_call builders
# --------------------------------------------------------------------------
def _build_fused(N, L, C, P, p_pad, block_n, out_dtype, cdt, approx_recip,
                 vmem_limit, single_buffer_weights):
    kernel = functools.partial(
        _pp_fused_kernel, num_patches=P, p_pad=p_pad,
        approx_recip=approx_recip, compute_dtype=cdt)
    return pl.pallas_call(
        kernel,
        out_shape=jax.ShapeDtypeStruct((N, L, C), out_dtype),
        grid=(N // block_n,),
        in_specs=[
            pl.BlockSpec((block_n, L, C), lambda n: (n, 0, 0)),
            _weight_spec((C, p_pad + C), single_buffer_weights),
            _weight_spec((C, C), single_buffer_weights),
        ],
        out_specs=pl.BlockSpec((block_n, L, C), lambda n: (n, 0, 0)),
        scratch_shapes=[
            pltpu.VMEM((block_n, L, p_pad), cdt),   # y  (classifier softmax)
            pltpu.VMEM((block_n, L, C), cdt),       # q  (projected queries)
        ],
        compiler_params=pltpu.CompilerParams(
            dimension_semantics=("parallel",),
            vmem_limit_bytes=vmem_limit,
        ),
    )


def _build_pass1(N, L, C, P, p_pad, tl, cdt, approx_recip, vmem_limit,
                 single_buffer_weights):
    kernel = functools.partial(
        _pp_pass1_kernel, num_patches=P, p_pad=p_pad,
        approx_recip=approx_recip, compute_dtype=cdt)
    return pl.pallas_call(
        kernel,
        out_shape=(
            jax.ShapeDtypeStruct((N, L, C), cdt),       # q
            jax.ShapeDtypeStruct((N, p_pad, C), cdt),   # keys * 1/sqrt(C)
            jax.ShapeDtypeStruct((N, p_pad, C), cdt),   # values
        ),
        grid=(N, L // tl),
        in_specs=[
            pl.BlockSpec((1, tl, C), lambda n, l: (n, l, 0)),
            _weight_spec((C, p_pad + C), single_buffer_weights),
            _weight_spec((C, C), single_buffer_weights),
        ],
        out_specs=(
            pl.BlockSpec((1, tl, C), lambda n, l: (n, l, 0)),
            pl.BlockSpec((1, p_pad, C), lambda n, l: (n, 0, 0)),
            pl.BlockSpec((1, p_pad, C), lambda n, l: (n, 0, 0)),
        ),
        scratch_shapes=[pltpu.VMEM((p_pad, C), jnp.float32)],   # keys accumulator
        compiler_params=pltpu.CompilerParams(
            dimension_semantics=("parallel", "arbitrary"),
            vmem_limit_bytes=vmem_limit,
        ),
    )


def _build_pass2(N, L, C, P, p_pad, tl, out_dtype, cdt, approx_recip,
                 vmem_limit):
    kernel = functools.partial(
        _pp_pass2_kernel, num_patches=P,
        approx_recip=approx_recip, compute_dtype=cdt)
    return pl.pallas_call(
        kernel,
        out_shape=jax.ShapeDtypeStruct((N, L, C), out_dtype),
        grid=(N, L // tl),
        in_specs=[
            pl.BlockSpec((1, tl, C), lambda n, l: (n, l, 0)),
            pl.BlockSpec((1, p_pad, C), lambda n, l: (n, 0, 0)),
            pl.BlockSpec((1, p_pad, C), lambda n, l: (n, 0, 0)),
        ],
        out_specs=pl.BlockSpec((1, tl, C), lambda n, l: (n, l, 0)),
        compiler_params=pltpu.CompilerParams(
            dimension_semantics=("parallel", "parallel"),
            vmem_limit_bytes=vmem_limit,
        ),
    )


# --------------------------------------------------------------------------
# Planning (generation-aware block / tile selection)
# --------------------------------------------------------------------------
def _plan(N, L, C, p_pad, x_bytes, out_bytes, c_bytes, vmem_limit, cores):
    budget = (vmem_limit * 4) // 5          # headroom for compiler-internal scratch
    weights = (C * (p_pad + C) + C * C) * c_bytes

    def fused_bytes(nb):
        io = 2 * nb * L * C * (x_bytes + out_bytes)   # double-buffered in/out
        scratch = nb * L * (p_pad + C) * c_bytes      # y / q VMEM scratch
        proj = nb * L * (p_pad + C) * 4               # f32 fused projection
        temps = L * (p_pad + 2 * C) * 4 + 4 * p_pad * C * 4
        return io + scratch + proj + 2 * weights + temps + (1 << 20)

    fitting = [d for d in range(1, N + 1) if N % d == 0 and fused_bytes(d) <= budget]
    if fitting:
        if cores > 1:
            # Prefer a grid divisible by the TC count so the "parallel" batch
            # axis fills both TensorCores (v7x); otherwise one maximal block.
            pref = [d for d in fitting if (N // d) % cores == 0]
            if pref:
                return "fused", max(pref)
        return "fused", max(fitting)

    # Fall back to the two-pass L-tiled pipeline (production L / tight VMEM).
    def ltiled_bytes(tl):
        p1 = (2 * tl * C * (x_bytes + c_bytes)        # x in + q out (double buf)
              + tl * (p_pad + C) * 4                  # f32 projection
              + p_pad * C * 4                         # keys accumulator scratch
              + 4 * p_pad * C * c_bytes               # keys/values out buffers
              + 2 * weights)
        p2 = (2 * tl * C * (c_bytes + out_bytes)      # q in + out (double buf)
              + 4 * p_pad * C * c_bytes               # keys/values inputs
              + tl * p_pad * 4)                       # f32 sim/attn
        return max(p1, p2) + (1 << 20)

    for tl in sorted((d for d in range(8, L + 1, 8) if L % d == 0), reverse=True):
        if ltiled_bytes(tl) <= budget:
            return "ltiled", tl
    raise ValueError("PPAttention Pallas kernel: no tiling fits the VMEM budget "
                     f"(L={L}, C={C}, budget={budget} bytes).")


# --------------------------------------------------------------------------
# Public wrapper
# --------------------------------------------------------------------------
def pp_attention(x, wc, wq, wv, *, compute_dtype=jnp.bfloat16,
                 block_n=None, l_tile=None):
    """Pixel-to-patch attention forward (query_project=True, patches_project=True).

    x : (N, H, W, C); wc : (P, C); wq, wv : (C, C) in PyTorch nn.Linear layout.
    """
    N, H, W, C = x.shape
    P = wc.shape[0]
    L = H * W
    p_pad = _round_up(P, 128)   # lane-dense patch axis; q columns lane-aligned
    cdt = jnp.dtype(compute_dtype)
    # approx=True only on the reduced-precision path: the ~2^-12 relative
    # perturbation of both softmax normalizations is intentional.
    approx_recip = cdt != jnp.dtype(jnp.float32)

    vmem_limit, cores = _tpu_budget()

    # Fused [classifier | zero pad | query] weight: one MXU matmul serves both
    # projections; the pad keeps q columns at a multiple-of-128 lane offset.
    parts = [wc.T.astype(cdt)]
    if p_pad > P:
        parts.append(jnp.zeros((C, p_pad - P), cdt))
    parts.append(wq.T.astype(cdt))
    wcq = jnp.concatenate(parts, axis=1)              # (C, p_pad + C)
    wv_t = wv.T.astype(cdt)                           # (C, C)

    # NOTE: no wrapper-side dtype cast — the kernel DMAs x at its native width
    # and casts on the VMEM tile (single HBM pass over x).
    x_flat = x.reshape(N, L, C)

    if l_tile is not None:
        mode, param = "ltiled", int(l_tile)
    elif block_n is not None:
        bn = int(block_n)
        while N % bn:
            bn -= 1
        mode, param = "fused", bn
    else:
        mode, param = _plan(N, L, C, p_pad, x.dtype.itemsize, x.dtype.itemsize,
                            cdt.itemsize, vmem_limit, cores)

    if mode == "fused":
        bn = param

        def build(single_buffer_weights):
            return _build_fused(N, L, C, P, p_pad, bn, x.dtype, cdt,
                                approx_recip, vmem_limit, single_buffer_weights)

        out_flat = _run_with_weight_fallback(build, x_flat, wcq, wv_t)
    else:
        tl = param
        if L % tl or tl % 8:
            raise ValueError(f"l_tile={tl} must divide H*W={L} and be a multiple of 8")

        def build1(single_buffer_weights):
            return _build_pass1(N, L, C, P, p_pad, tl, cdt, approx_recip,
                                vmem_limit, single_buffer_weights)

        q, keys_s, vals = _run_with_weight_fallback(build1, x_flat, wcq, wv_t)
        out_flat = _build_pass2(N, L, C, P, p_pad, tl, x.dtype, cdt,
                                approx_recip, vmem_limit)(q, keys_s, vals)

    return out_flat.reshape(N, H, W, C)


def pp_attention_ref(x, wc, wq, wv):
    """Plain-JAX reference mirroring the PyTorch forward."""
    C = x.shape[-1]
    q = jnp.einsum("nhwc,dc->nhwd", x, wq)          # query_mat (Linear, no bias)
    y = jax.nn.softmax(jnp.einsum("nhwc,pc->nhwp", x, wc), axis=3)
    keys = jnp.einsum("nhwc,nhwp->npc", q, y)
    values = jnp.einsum("npc,dc->npd", keys, wv)    # values_mat (Linear, no bias)
    sim = jnp.einsum("npc,nhwc->nhwp", keys, q) / (C ** 0.5)
    sim = jax.nn.softmax(sim, axis=-1)
    return jnp.einsum("nhwp,npc->nhwc", sim, values)


if __name__ == "__main__":
    N, H, W, C, P = 2, 8, 8, 32, 16

    key = jax.random.PRNGKey(0)
    kx, kc, kq, kv = jax.random.split(key, 4)

    x = jax.random.normal(kx, (N, H, W, C), dtype=jnp.float32)

    # Deterministic parameter init (~ PyTorch Linear uniform(-1/sqrt(fan_in), ...))
    bound = 1.0 / math.sqrt(C)
    wc = jax.random.uniform(kc, (P, C), jnp.float32, -bound, bound)  # classifier
    wq = jax.random.uniform(kq, (C, C), jnp.float32, -bound, bound)  # query_mat
    wv = jax.random.uniform(kv, (C, C), jnp.float32, -bound, bound)  # values_mat

    ref = jax.block_until_ready(pp_attention_ref(x, wc, wq, wv))

    # Exact-precision fused path: f32 operands, exact reciprocal.
    out_f32 = jax.block_until_ready(
        pp_attention(x, wc, wq, wv, compute_dtype=jnp.float32))
    np.testing.assert_allclose(np.asarray(out_f32), np.asarray(ref),
                               rtol=1e-4, atol=1e-4)

    # Fast fused path: bf16 MXU operands (f32 accumulation) + approx reciprocal.
    out_bf16 = jax.block_until_ready(
        pp_attention(x, wc, wq, wv, compute_dtype=jnp.bfloat16))
    np.testing.assert_allclose(np.asarray(out_bf16), np.asarray(ref),
                               rtol=5e-2, atol=5e-2)

    # L-tiled two-pass path (what the planner falls back to at production L /
    # tight VMEM); forced here at a small tile to validate its numerics.
    out_lt = jax.block_until_ready(
        pp_attention(x, wc, wq, wv, compute_dtype=jnp.float32, l_tile=32))
    np.testing.assert_allclose(np.asarray(out_lt), np.asarray(ref),
                               rtol=1e-4, atol=1e-4)

    print("KERNEL_OK")
</pallas_src>

<mosaic_0001>
module attributes {stable_mosaic.version = 11 : i64} {
  func.func @_pp_fused_kernel(%arg0: i32, %arg1: memref<2x64x32xf32, #tpu.memory_space<vmem>>, %arg2: memref<32x160xf32, #tpu.memory_space<vmem>>, %arg3: memref<32x32xf32, #tpu.memory_space<vmem>>, %arg4: memref<2x64x32xf32, #tpu.memory_space<vmem>>, %arg5: memref<2x64x128xf32, #tpu.memory_space<vmem>>, %arg6: memref<2x64x32xf32, #tpu.memory_space<vmem>>) attributes {dimension_semantics = [#tpu.dimension_semantics<parallel>], iteration_bounds = array<i64: 1>, scalar_prefetch = 0 : i64, scratch_operands = 2 : i64, tpu.core_type = #tpu.core_type<tc>, window_params = [{transform_indices = @transform_0, window_bounds = array<i64: 2, 64, 32>}, {pipeline_mode = #tpu.pipeline_mode<synchronous>, transform_indices = @transform_1, window_bounds = array<i64: 32, 160>}, {pipeline_mode = #tpu.pipeline_mode<synchronous>, transform_indices = @transform_2, window_bounds = array<i64: 32, 32>}, {transform_indices = @transform_3, window_bounds = array<i64: 2, 64, 32>}]} {
    %c0 = arith.constant 0 : index
    %c0_0 = arith.constant 0 : index
    %c0_1 = arith.constant 0 : index
    %0 = vector.load %arg1[%c0, %c0_0, %c0_1] : memref<2x64x32xf32, #tpu.memory_space<vmem>>, vector<2x64x32xf32>
    %1 = vector.shape_cast %0 : vector<2x64x32xf32> to vector<128x32xf32>
    %c0_2 = arith.constant 0 : index
    %c0_3 = arith.constant 0 : index
    %2 = vector.load %arg2[%c0_2, %c0_3] : memref<32x160xf32, #tpu.memory_space<vmem>>, vector<32x160xf32>
    %cst = arith.constant dense<0.000000e+00> : vector<128x160xf32>
    %3 = tpu.matmul %1, %2, %cst {dimension_numbers = #tpu.dot_dimension_numbers<[1], [0], [0], [1], [0, 0, 1, 1], [], []>} : vector<128x32xf32>, vector<32x160xf32>, vector<128x160xf32> -> vector<128x160xf32>
    %4 = tpu.iota {dimensions = array<i32: 1>} : vector<128x128xi32>
    %c16_i32 = arith.constant 16 : i32
    %5 = vector.broadcast %c16_i32 : i32 to vector<128x128xi32>
    %6 = arith.cmpi slt, %4, %5 : vector<128x128xi32>
    %7 = vector.extract_strided_slice %3 {offsets = [0, 0], sizes = [128, 128], strides = [1, 1]} : vector<128x160xf32> to vector<128x128xf32>
    %cst_4 = arith.constant -1.000000e+30 : f32
    %8 = vector.broadcast %cst_4 : f32 to vector<128x128xf32>
    %9 = arith.select %6, %7, %8 : vector<128x128xi1>, vector<128x128xf32>
    %cst_5 = arith.constant dense<0xFF800000> : vector<128xf32>
    %10 = vector.multi_reduction <maximumf>, %9, %cst_5 [1] : vector<128x128xf32> to vector<128xf32>
    %11 = vector.shape_cast %10 : vector<128xf32> to vector<128x1xf32>
    %12 = vector.broadcast %11 : vector<128x1xf32> to vector<128x128xf32>
    %13 = arith.subf %9, %12 : vector<128x128xf32>
    %14 = math.exp %13 : vector<128x128xf32>
    %cst_6 = arith.constant dense<0.000000e+00> : vector<128xf32>
    %15 = vector.multi_reduction <add>, %14, %cst_6 [1] : vector<128x128xf32> to vector<128xf32>
    %16 = vector.shape_cast %15 : vector<128xf32> to vector<128x1xf32>
    %17 = tpu.reciprocal %16 : vector<128x1xf32> -> vector<128x1xf32>
    %18 = vector.broadcast %17 : vector<128x1xf32> to vector<128x128xf32>
    %19 = arith.mulf %14, %18 : vector<128x128xf32>
    %20 = vector.shape_cast %19 : vector<128x128xf32> to vector<2x64x128xf32>
    %c0_7 = arith.constant 0 : index
    %c0_8 = arith.constant 0 : index
    %c0_9 = arith.constant 0 : index
    %21 = vector.load %arg5[%c0_7, %c0_8, %c0_9] : memref<2x64x128xf32, #tpu.memory_space<vmem>>, vector<2x64x128xf32>
    tpu.vector_store %arg5[%c0_7, %c0_8, %c0_9], %20 {strides = array<i32>} : memref<2x64x128xf32, #tpu.memory_space<vmem>>, vector<2x64x128xf32>,
    %22 = vector.extract_strided_slice %3 {offsets = [0, 128], sizes = [128, 32], strides = [1, 1]} : vector<128x160xf32> to vector<128x32xf32>
    %23 = vector.shape_cast %22 : vector<128x32xf32> to vector<2x64x32xf32>
    %c0_10 = arith.constant 0 : index
    %c0_11 = arith.constant 0 : index
    %c0_12 = arith.constant 0 : index
    %24 = vector.load %arg6[%c0_10, %c0_11, %c0_12] : memref<2x64x32xf32, #tpu.memory_space<vmem>>, vector<2x64x32xf32>
    tpu.vector_store %arg6[%c0_10, %c0_11, %c0_12], %23 {strides = array<i32>} : memref<2x64x32xf32, #tpu.memory_space<vmem>>, vector<2x64x32xf32>,
    %25 = tpu.iota {dimensions = array<i32: 1>} : vector<64x128xi32>
    %c16_i32_13 = arith.constant 16 : i32
    %26 = vector.broadcast %c16_i32_13 : i32 to vector<64x128xi32>
    %27 = arith.cmpi slt, %25, %26 : vector<64x128xi32>
    %cst_14 = arith.constant -1.000000e+30 : f32
    %c0_i32 = arith.constant 0 : i32
    %c2_i32 = arith.constant 2 : i32
    %28 = arith.addi %c0_i32, %c2_i32 : i32
    %c1_i32 = arith.constant 1 : i32
    scf.for %arg7 = %c0_i32 to %28 step %c1_i32  : i32 {
      %29 = arith.index_cast %arg7 : i32 to index
      %c0_16 = arith.constant 0 : index
      %c0_17 = arith.constant 0 : index
      %30 = vector.load %arg5[%29, %c0_16, %c0_17] : memref<2x64x128xf32, #tpu.memory_space<vmem>>, vector<1x64x128xf32>
      %31 = vector.shape_cast %30 : vector<1x64x128xf32> to vector<64x128xf32>
      %32 = arith.index_cast %arg7 : i32 to index
      %c0_18 = arith.constant 0 : index
      %c0_19 = arith.constant 0 : index
      %33 = vector.load %arg6[%32, %c0_18, %c0_19] : memref<2x64x32xf32, #tpu.memory_space<vmem>>, vector<1x64x32xf32>
      %34 = vector.shape_cast %33 : vector<1x64x32xf32> to vector<64x32xf32>
      %cst_20 = arith.constant dense<0.000000e+00> : vector<128x32xf32>
      %35 = tpu.matmul %31, %34, %cst_20 {dimension_numbers = #tpu.dot_dimension_numbers<[0], [0], [1], [1], [0, 1, 1, 1], [], []>} : vector<64x128xf32>, vector<64x32xf32>, vector<128x32xf32> -> vector<128x32xf32>
      %c0_21 = arith.constant 0 : index
      %c0_22 = arith.constant 0 : index
      %36 = vector.load %arg3[%c0_21, %c0_22] : memref<32x32xf32, #tpu.memory_space<vmem>>, vector<32x32xf32>
      %cst_23 = arith.constant dense<0.000000e+00> : vector<128x32xf32>
      %37 = tpu.matmul %35, %36, %cst_23 {dimension_numbers = #tpu.dot_dimension_numbers<[1], [0], [0], [1], [0, 0, 1, 1], [], []>} : vector<128x32xf32>, vector<32x32xf32>, vector<128x32xf32> -> vector<128x32xf32>
      %cst_24 = arith.constant 0.176776692 : f32
      %38 = vector.broadcast %cst_24 : f32 to vector<128x32xf32>
      %39 = arith.mulf %35, %38 : vector<128x32xf32>
      %cst_25 = arith.constant dense<0.000000e+00> : vector<64x128xf32>
      %40 = tpu.matmul %34, %39, %cst_25 {dimension_numbers = #tpu.dot_dimension_numbers<[1], [1], [0], [0], [0, 0, 1, 0], [], []>} : vector<64x32xf32>, vector<128x32xf32>, vector<64x128xf32> -> vector<64x128xf32>
      %41 = vector.broadcast %cst_14 : f32 to vector<64x128xf32>
      %42 = arith.select %27, %40, %41 : vector<64x128xi1>, vector<64x128xf32>
      %cst_26 = arith.constant dense<0xFF800000> : vector<64xf32>
      %43 = vector.multi_reduction <maximumf>, %42, %cst_26 [1] : vector<64x128xf32> to vector<64xf32>
      %44 = vector.shape_cast %43 : vector<64xf32> to vector<64x1xf32>
      %45 = vector.broadcast %44 : vector<64x1xf32> to vector<64x128xf32>
      %46 = arith.subf %42, %45 : vector<64x128xf32>
      %47 = math.exp %46 : vector<64x128xf32>
      %cst_27 = arith.constant dense<0.000000e+00> : vector<64xf32>
      %48 = vector.multi_reduction <add>, %47, %cst_27 [1] : vector<64x128xf32> to vector<64xf32>
      %49 = vector.shape_cast %48 : vector<64xf32> to vector<64x1xf32>
      %50 = tpu.reciprocal %49 : vector<64x1xf32> -> vector<64x1xf32>
      %51 = vector.broadcast %50 : vector<64x1xf32> to vector<64x128xf32>
      %52 = arith.mulf %47, %51 : vector<64x128xf32>
      %cst_28 = arith.constant dense<0.000000e+00> : vector<64x32xf32>
      %53 = tpu.matmul %52, %37, %cst_28 {dimension_numbers = #tpu.dot_dimension_numbers<[1], [0], [0], [1], [0, 0, 1, 1], [], []>} : vector<64x128xf32>, vector<128x32xf32>, vector<64x32xf32> -> vector<64x32xf32>
      %54 = arith.index_cast %arg7 : i32 to index
      %c0_29 = arith.constant 0 : index
      %c0_30 = arith.constant 0 : index
      %55 = vector.load %arg4[%54, %c0_29, %c0_30] : memref<2x64x32xf32, #tpu.memory_space<vmem>>, vector<1x64x32xf32>
      %56 = vector.shape_cast %55 : vector<1x64x32xf32> to vector<64x32xf32>
      %57 = vector.shape_cast %53 : vector<64x32xf32> to vector<1x64x32xf32>
      tpu.vector_store %arg4[%54, %c0_29, %c0_30], %57 {strides = array<i32>} : memref<2x64x32xf32, #tpu.memory_space<vmem>>, vector<1x64x32xf32>,
    }
    %c2_i32_15 = arith.constant 2 : i32
    return
  }
  func.func @transform_0(%arg0: i32) -> (i32, i32, i32) {
    %c0_i32 = arith.constant 0 : i32
    %c0_i32_0 = arith.constant 0 : i32
    %c0_i32_1 = arith.constant 0 : i32
    return %arg0, %c0_i32, %c0_i32_0 : i32, i32, i32
  }
  func.func @transform_1(%arg0: i32) -> (i32, i32) {
    %c0_i32 = arith.constant 0 : i32
    %c0_i32_0 = arith.constant 0 : i32
    %c0_i32_1 = arith.constant 0 : i32
    return %c0_i32, %c0_i32_0 : i32, i32
  }
  func.func @transform_2(%arg0: i32) -> (i32, i32) {
    %c0_i32 = arith.constant 0 : i32
    %c0_i32_0 = arith.constant 0 : i32
    %c0_i32_1 = arith.constant 0 : i32
    return %c0_i32, %c0_i32_0 : i32, i32
  }
  func.func @transform_3(%arg0: i32) -> (i32, i32, i32) {
    %c0_i32 = arith.constant 0 : i32
    %c0_i32_0 = arith.constant 0 : i32
    %c0_i32_1 = arith.constant 0 : i32
    return %arg0, %c0_i32, %c0_i32_0 : i32, i32, i32
  }
}

module attributes {stable_mosaic.version = 11 : i64} {
  func.func @_pp_fused_kernel(%arg0: i32, %arg1: memref<2x64x32xf32, #tpu.memory_space<vmem>>, %arg2: memref<32x160xf32, #tpu.memory_space<vmem>>, %arg3: memref<32x32xf32, #tpu.memory_space<vmem>>, %arg4: memref<2x64x32xf32, #tpu.memory_space<vmem>>, %arg5: memref<2x64x128xf32, #tpu.memory_space<vmem>>, %arg6: memref<2x64x32xf32, #tpu.memory_space<vmem>>) attributes {dimension_semantics = [#tpu.dimension_semantics<parallel>], iteration_bounds = array<i64: 1>, scalar_prefetch = 0 : i64, scratch_operands = 2 : i64, tpu.core_type = #tpu.core_type<tc>, window_params = [{transform_indices = @transform_0, window_bounds = array<i64: 2, 64, 32>}, {pipeline_mode = #tpu.pipeline_mode<synchronous>, transform_indices = @transform_1, window_bounds = array<i64: 32, 160>}, {pipeline_mode = #tpu.pipeline_mode<synchronous>, transform_indices = @transform_2, window_bounds = array<i64: 32, 32>}, {transform_indices = @transform_3, window_bounds = array<i64: 2, 64, 32>}]} {
    %c0 = arith.constant 0 : index
    %c0_0 = arith.constant 0 : index
    %c0_1 = arith.constant 0 : index
    %0 = vector.load %arg1[%c0, %c0_0, %c0_1] : memref<2x64x32xf32, #tpu.memory_space<vmem>>, vector<2x64x32xf32>
    %1 = vector.shape_cast %0 : vector<2x64x32xf32> to vector<128x32xf32>
    %c0_2 = arith.constant 0 : index
    %c0_3 = arith.constant 0 : index
    %2 = vector.load %arg2[%c0_2, %c0_3] : memref<32x160xf32, #tpu.memory_space<vmem>>, vector<32x160xf32>
    %cst = arith.constant dense<0.000000e+00> : vector<128x160xf32>
    %3 = tpu.matmul %1, %2, %cst {dimension_numbers = #tpu.dot_dimension_numbers<[1], [0], [0], [1], [0, 0, 1, 1], [], []>} : vector<128x32xf32>, vector<32x160xf32>, vector<128x160xf32> -> vector<128x160xf32>
    %4 = tpu.iota {dimensions = array<i32: 1>} : vector<128x128xi32>
    %c16_i32 = arith.constant 16 : i32
    %5 = vector.broadcast %c16_i32 : i32 to vector<128x128xi32>
    %6 = arith.cmpi slt, %4, %5 : vector<128x128xi32>
    %7 = vector.extract_strided_slice %3 {offsets = [0, 0], sizes = [128, 128], strides = [1, 1]} : vector<128x160xf32> to vector<128x128xf32>
    %cst_4 = arith.constant -1.000000e+30 : f32
    %8 = vector.broadcast %cst_4 : f32 to vector<128x128xf32>
    %9 = arith.select %6, %7, %8 : vector<128x128xi1>, vector<128x128xf32>
    %cst_5 = arith.constant dense<0xFF800000> : vector<128xf32>
    %10 = vector.multi_reduction <maximumf>, %9, %cst_5 [1] : vector<128x128xf32> to vector<128xf32>
    %11 = vector.shape_cast %10 : vector<128xf32> to vector<128x1xf32>
    %12 = vector.broadcast %11 : vector<128x1xf32> to vector<128x128xf32>
    %13 = arith.subf %9, %12 : vector<128x128xf32>
    %14 = math.exp %13 : vector<128x128xf32>
    %cst_6 = arith.constant dense<0.000000e+00> : vector<128xf32>
    %15 = vector.multi_reduction <add>, %14, %cst_6 [1] : vector<128x128xf32> to vector<128xf32>
    %16 = vector.shape_cast %15 : vector<128xf32> to vector<128x1xf32>
    %17 = tpu.reciprocal %16 : vector<128x1xf32> -> vector<128x1xf32>
    %18 = vector.broadcast %17 : vector<128x1xf32> to vector<128x128xf32>
    %19 = arith.mulf %14, %18 : vector<128x128xf32>
    %20 = vector.shape_cast %19 : vector<128x128xf32> to vector<2x64x128xf32>
    %c0_7 = arith.constant 0 : index
    %c0_8 = arith.constant 0 : index
    %c0_9 = arith.constant 0 : index
    %21 = vector.load %arg5[%c0_7, %c0_8, %c0_9] : memref<2x64x128xf32, #tpu.memory_space<vmem>>, vector<2x64x128xf32>
    tpu.vector_store %arg5[%c0_7, %c0_8, %c0_9], %20 {strides = array<i32>} : memref<2x64x128xf32, #tpu.memory_space<vmem>>, vector<2x64x128xf32>,
    %22 = vector.extract_strided_slice %3 {offsets = [0, 128], sizes = [128, 32], strides = [1, 1]} : vector<128x160xf32> to vector<128x32xf32>
    %23 = vector.shape_cast %22 : vector<128x32xf32> to vector<2x64x32xf32>
    %c0_10 = arith.constant 0 : index
    %c0_11 = arith.constant 0 : index
    %c0_12 = arith.constant 0 : index
    %24 = vector.load %arg6[%c0_10, %c0_11, %c0_12] : memref<2x64x32xf32, #tpu.memory_space<vmem>>, vector<2x64x32xf32>
    tpu.vector_store %arg6[%c0_10, %c0_11, %c0_12], %23 {strides = array<i32>} : memref<2x64x32xf32, #tpu.memory_space<vmem>>, vector<2x64x32xf32>,
    %25 = tpu.iota {dimensions = array<i32: 1>} : vector<64x128xi32>
    %c16_i32_13 = arith.constant 16 : i32
    %26 = vector.broadcast %c16_i32_13 : i32 to vector<64x128xi32>
    %27 = arith.cmpi slt, %25, %26 : vector<64x128xi32>
    %cst_14 = arith.constant -1.000000e+30 : f32
    %c0_i32 = arith.constant 0 : i32
    %c2_i32 = arith.constant 2 : i32
    %28 = arith.addi %c0_i32, %c2_i32 : i32
    %c1_i32 = arith.constant 1 : i32
    scf.for %arg7 = %c0_i32 to %28 step %c1_i32  : i32 {
      %29 = arith.index_cast %arg7 : i32 to index
      %c0_16 = arith.constant 0 : index
      %c0_17 = arith.constant 0 : index
      %30 = vector.load %arg5[%29, %c0_16, %c0_17] : memref<2x64x128xf32, #tpu.memory_space<vmem>>, vector<1x64x128xf32>
      %31 = vector.shape_cast %30 : vector<1x64x128xf32> to vector<64x128xf32>
      %32 = arith.index_cast %arg7 : i32 to index
      %c0_18 = arith.constant 0 : index
      %c0_19 = arith.constant 0 : index
      %33 = vector.load %arg6[%32, %c0_18, %c0_19] : memref<2x64x32xf32, #tpu.memory_space<vmem>>, vector<1x64x32xf32>
      %34 = vector.shape_cast %33 : vector<1x64x32xf32> to vector<64x32xf32>
      %cst_20 = arith.constant dense<0.000000e+00> : vector<128x32xf32>
      %35 = tpu.matmul %31, %34, %cst_20 {dimension_numbers = #tpu.dot_dimension_numbers<[0], [0], [1], [1], [0, 1, 1, 1], [], []>} : vector<64x128xf32>, vector<64x32xf32>, vector<128x32xf32> -> vector<128x32xf32>
      %c0_21 = arith.constant 0 : index
      %c0_22 = arith.constant 0 : index
      %36 = vector.load %arg3[%c0_21, %c0_22] : memref<32x32xf32, #tpu.memory_space<vmem>>, vector<32x32xf32>
      %cst_23 = arith.constant dense<0.000000e+00> : vector<128x32xf32>
      %37 = tpu.matmul %35, %36, %cst_23 {dimension_numbers = #tpu.dot_dimension_numbers<[1], [0], [0], [1], [0, 0, 1, 1], [], []>} : vector<128x32xf32>, vector<32x32xf32>, vector<128x32xf32> -> vector<128x32xf32>
      %cst_24 = arith.constant 0.176776692 : f32
      %38 = vector.broadcast %cst_24 : f32 to vector<128x32xf32>
      %39 = arith.mulf %35, %38 : vector<128x32xf32>
      %cst_25 = arith.constant dense<0.000000e+00> : vector<64x128xf32>
      %40 = tpu.matmul %34, %39, %cst_25 {dimension_numbers = #tpu.dot_dimension_numbers<[1], [1], [0], [0], [0, 0, 1, 0], [], []>} : vector<64x32xf32>, vector<128x32xf32>, vector<64x128xf32> -> vector<64x128xf32>
      %41 = vector.broadcast %cst_14 : f32 to vector<64x128xf32>
      %42 = arith.select %27, %40, %41 : vector<64x128xi1>, vector<64x128xf32>
      %cst_26 = arith.constant dense<0xFF800000> : vector<64xf32>
      %43 = vector.multi_reduction <maximumf>, %42, %cst_26 [1] : vector<64x128xf32> to vector<64xf32>
      %44 = vector.shape_cast %43 : vector<64xf32> to vector<64x1xf32>
      %45 = vector.broadcast %44 : vector<64x1xf32> to vector<64x128xf32>
      %46 = arith.subf %42, %45 : vector<64x128xf32>
      %47 = math.exp %46 : vector<64x128xf32>
      %cst_27 = arith.constant dense<0.000000e+00> : vector<64xf32>
      %48 = vector.multi_reduction <add>, %47, %cst_27 [1] : vector<64x128xf32> to vector<64xf32>
      %49 = vector.shape_cast %48 : vector<64xf32> to vector<64x1xf32>
      %50 = tpu.reciprocal %49 : vector<64x1xf32> -> vector<64x1xf32>
      %51 = vector.broadcast %50 : vector<64x1xf32> to vector<64x128xf32>
      %52 = arith.mulf %47, %51 : vector<64x128xf32>
      %cst_28 = arith.constant dense<0.000000e+00> : vector<64x32xf32>
      %53 = tpu.matmul %52, %37, %cst_28 {dimension_numbers = #tpu.dot_dimension_numbers<[1], [0], [0], [1], [0, 0, 1, 1], [], []>} : vector<64x128xf32>, vector<128x32xf32>, vector<64x32xf32> -> vector<64x32xf32>
      %54 = arith.index_cast %arg7 : i32 to index
      %c0_29 = arith.constant 0 : index
      %c0_30 = arith.constant 0 : index
      %55 = vector.load %arg4[%54, %c0_29, %c0_30] : memref<2x64x32xf32, #tpu.memory_space<vmem>>, vector<1x64x32xf32>
      %56 = vector.shape_cast %55 : vector<1x64x32xf32> to vector<64x32xf32>
      %57 = vector.shape_cast %53 : vector<64x32xf32> to vector<1x64x32xf32>
      tpu.vector_store %arg4[%54, %c0_29, %c0_30], %57 {strides = array<i32>} : memref<2x64x32xf32, #tpu.memory_space<vmem>>, vector<1x64x32xf32>,
    }
    %c2_i32_15 = arith.constant 2 : i32
    return
  }
  func.func @transform_0(%arg0: i32) -> (i32, i32, i32) {
    %c0_i32 = arith.constant 0 : i32
    %c0_i32_0 = arith.constant 0 : i32
    %c0_i32_1 = arith.constant 0 : i32
    return %arg0, %c0_i32, %c0_i32_0 : i32, i32, i32
  }
  func.func @transform_1(%arg0: i32) -> (i32, i32) {
    %c0_i32 = arith.constant 0 : i32
    %c0_i32_0 = arith.constant 0 : i32
    %c0_i32_1 = arith.constant 0 : i32
    return %c0_i32, %c0_i32_0 : i32, i32
  }
  func.func @transform_2(%arg0: i32) -> (i32, i32) {
    %c0_i32 = arith.constant 0 : i32
    %c0_i32_0 = arith.constant 0 : i32
    %c0_i32_1 = arith.constant 0 : i32
    return %c0_i32, %c0_i32_0 : i32, i32
  }
  func.func @transform_3(%arg0: i32) -> (i32, i32, i32) {
    %c0_i32 = arith.constant 0 : i32
    %c0_i32_0 = arith.constant 0 : i32
    %c0_i32_1 = arith.constant 0 : i32
    return %arg0, %c0_i32, %c0_i32_0 : i32, i32, i32
  }
}

</mosaic_0001>

<bundles_post_ra>
// kernel: tpu_custom_call.1
= control target key start
LH: loop header
LB: loop body
LE: loop exit
PB: predicated region body
PF: predicated region fallthrough
CT: control target
= control target key end

     0   :  { %v1848_v3 = vmov 0.0   ;;  %vm38_vm0 = vcmask 261120   ;;  %v248_v29 = vlaneseq  ;;  %s2325_s1 = inlined_call_operand.vmem [shape: f32[32,160], index: 1, kind: input, shape index: {}]   ;;  %s2326_s2 = inlined_call_operand.vmem [shape: f32[32,32], index: 2, kind: input, shape index: {}]   ;;  %s2327_s3 = inlined_call_operand.vmem [shape: f32[2,64,32], index: 3, kind: output, shape index: {}]   ;;  %s2328_s0 = inlined_call_operand.vmem [shape: f32[2,64,32], index: 0, kind: input, shape index: {}]  }
   0x1   :  { %v31_v0 = vld [vmem:[%s2325_s1 + $0x8] sm:$0xff]  ;;  %v33_v1 = vld [vmem:[%s2325_s1 + $0x18] sm:$0xff]  ;;  %v30_v2 = vld [vmem:[%s2325_s1] sm:$0xff]  ;;  %151 = vmatprep.mubr.f32.mxu0 %v1848_v3  ;;  %199 = vmatprep.mubr.f32.mxu1 %v1848_v3 }
   0x2   :  { %v1618_v4 = vpack.c.bf16 %v33_v1, %v31_v0  ;;  %v32_v5 = vld [vmem:[%s2325_s1 + $0x10] sm:$0xff]  ;;  %v35_v6 = vld [vmem:[%s2325_s1 + $0x28] sm:$0xff]  ;;  %v37_v7 = vld [vmem:[%s2325_s1 + $0x38] sm:$0xff]  ;;  %v1973_v30 = vand.u32 127, %v248_v29 }
   0x3   :  { %v1620_v8 = vpack.c.bf16 %v32_v5, %v30_v2  ;;  %v1622_v9 = vpack.c.bf16 %v37_v7, %v35_v6  ;;  %v34_v10 = vld [vmem:[%s2325_s1 + $0x20] sm:$0xff]  ;;  %v36_v11 = vld [vmem:[%s2325_s1 + $0x30] sm:$0xff]  ;;  %v15_v15 = vld [vmem:[%s2328_s0 + $0x8] sm:$0xff] }
   0x4   :  { %1619 = vmatprep.subr.bf16.mxu0 %v1618_v4  ;;  %1730 = vmatprep.subr.bf16.mxu1 %v1618_v4  ;;  %v1624_v12 = vpack.c.bf16 %v36_v11, %v34_v10  ;;  %v14_v13 = vld [vmem:[%s2328_s0] sm:$0xff]  ;;  %v23_v16 = vld [vmem:[%s2328_s0 + $0x48] sm:$0xff]  ;;  %v16_v17 = vld [vmem:[%s2328_s0 + $0x10] sm:$0xff]  ;;  %vm250_vm1 = vcmp.lt.s32.totalorder %v1973_v30, 16 }
   0x5   :  { %1621 = vmatpush1.bf16.msra.mxu0 %v1620_v8  ;;  %1732 = vmatpush1.bf16.msra.mxu1 %v1620_v8  ;;  %v22_v14 = vld [vmem:[%s2328_s0 + $0x40] sm:$0xff]  ;;  %v24_v18 = vld [vmem:[%s2328_s0 + $0x50] sm:$0xff]  ;;  %v17_v19 = vld [vmem:[%s2328_s0 + $0x18] sm:$0xff] }
   0x6   :  { %1623 = vmatprep.subr.bf16.mxu0 %v1622_v9  ;;  %1731 = vmatprep.subr.bf16.mxu1 %v1622_v9  ;;  %v25_v20 = vld [vmem:[%s2328_s0 + $0x58] sm:$0xff]  ;;  %v18_v21 = vld [vmem:[%s2328_s0 + $0x20] sm:$0xff]  ;;  %v19_v23 = vld [vmem:[%s2328_s0 + $0x28] sm:$0xff] }
   0x7   :  { %v26_v22 = vld [vmem:[%s2328_s0 + $0x60] sm:$0xff]  ;;  %v27_v24 = vld [vmem:[%s2328_s0 + $0x68] sm:$0xff]  ;;  %v20_v25 = vld [vmem:[%s2328_s0 + $0x30] sm:$0xff] }
   0x8   :  { %v28_v26 = vld [vmem:[%s2328_s0 + $0x70] sm:$0xff]  ;;  %v21_v27 = vld [vmem:[%s2328_s0 + $0x38] sm:$0xff] }
   0x9   :  { %1625 = vmatpush1.bf16.msra.mxu0 %v1624_v12  ;;  %1733 = vmatpush1.bf16.msra.mxu1 %v1624_v12  ;;  %v29_v28 = vld [vmem:[%s2328_s0 + $0x78] sm:$0xff]  ;;  %s2152_s0 = smov 0  }
   0xc   :  { %1293 = vmatmul.mubr.msk.f32.vlgmr.msra.gmra.mrb[0].mxu0 %vm38_vm0, %v14_v13  ;;  %1301 = vmatmul.mubr.msk.f32.vlgmr.msra.gmra.mrb[0].mxu1 %vm38_vm0, %v22_v14 }
   0xd   :  { %157 = vmatprep.mubr.f32.mxu0 %v1848_v3  ;;  %205 = vmatprep.mubr.f32.mxu1 %v1848_v3 }
  0x10   :  { %1294 = vmatmul.mubr.msk.f32.gmra.mrb[2].mxu0 %vm38_vm0, %v15_v15  ;;  %1302 = vmatmul.mubr.msk.f32.gmra.mrb[2].mxu1 %vm38_vm0, %v23_v16 }
  0x11   :  { %163 = vmatprep.mubr.f32.mxu0 %v1848_v3  ;;  %211 = vmatprep.mubr.f32.mxu1 %v1848_v3 }
  0x14   :  { %1295 = vmatmul.mubr.msk.f32.gmra.mrb[4].mxu0 %vm38_vm0, %v16_v17  ;;  %1303 = vmatmul.mubr.msk.f32.gmra.mrb[4].mxu1 %vm38_vm0, %v24_v18 }
  0x15   :  { %169 = vmatprep.mubr.f32.mxu0 %v1848_v3  ;;  %217 = vmatprep.mubr.f32.mxu1 %v1848_v3 }
  0x18   :  { %1296 = vmatmul.mubr.msk.f32.gmra.mrb[6].mxu0 %vm38_vm0, %v17_v19  ;;  %1304 = vmatmul.mubr.msk.f32.gmra.mrb[6].mxu1 %vm38_vm0, %v25_v20 }
  0x19   :  { %175 = vmatprep.mubr.f32.mxu0 %v1848_v3  ;;  %223 = vmatprep.mubr.f32.mxu1 %v1848_v3 }
  0x1c   :  { %1297 = vmatmul.mubr.msk.f32.gmra.mrb[8].mxu0 %vm38_vm0, %v18_v21  ;;  %1305 = vmatmul.mubr.msk.f32.gmra.mrb[8].mxu1 %vm38_vm0, %v26_v22 }
  0x1d   :  { %181 = vmatprep.mubr.f32.mxu0 %v1848_v3  ;;  %229 = vmatprep.mubr.f32.mxu1 %v1848_v3 }
  0x20   :  { %1298 = vmatmul.mubr.msk.f32.gmra.mrb[10].mxu0 %vm38_vm0, %v19_v23  ;;  %1306 = vmatmul.mubr.msk.f32.gmra.mrb[10].mxu1 %vm38_vm0, %v27_v24 }
  0x21   :  { %187 = vmatprep.mubr.f32.mxu0 %v1848_v3  ;;  %235 = vmatprep.mubr.f32.mxu1 %v1848_v3 }
  0x24   :  { %1299 = vmatmul.mubr.msk.f32.gmra.mrb[12].mxu0 %vm38_vm0, %v20_v25  ;;  %1307 = vmatmul.mubr.msk.f32.gmra.mrb[12].mxu1 %vm38_vm0, %v28_v26 }
  0x25   :  { %193 = vmatprep.mubr.f32.mxu0 %v1848_v3  ;;  %241 = vmatprep.mubr.f32.mxu1 %v1848_v3 }
  0x28   :  { %1300 = vmatmul.mubr.msk.f32.gmra.mrb[14].mxu0 %vm38_vm0, %v21_v27  ;;  %1308 = vmatmul.mubr.msk.f32.gmra.mrb[14].mxu1 %vm38_vm0, %v29_v28 }
  0xdf   :  { %v153_v31 = vpop.f32.mrb[0].mxu0  ;;  %v201_v32 = vpop.f32.mrb[0].mxu1 }
  0xe0   :  { %v155_v33 = vpop.f32.mrb[1].mxu0  ;;  %v1978_v34 = vsel %vm250_vm1, %v153_v31, -1e+30  ;;  %v203_v35 = vpop.f32.mrb[1].mxu1  ;;  %v1985_v36 = vsel %vm250_vm1, %v201_v32, -1e+30 }
  0xe1   :  { %427 = vst.msk [vmem:[#allocation3] sm:$0xff] %vm38_vm0, %v155_v33  ;;  %267 = vmax.xlane.f32.xlu0 %v1978_v34  ;;  %435 = vst.msk [vmem:[#allocation3 + $0x40] sm:$0xff] %vm38_vm0, %v203_v35 }
  0xe3   :  { %v207_v37 = vpop.f32.mrb[2].mxu1  ;;  %v159_v38 = vpop.f32.mrb[2].mxu0 }
  0xe4   :  { %v1989_v39 = vsel %vm250_vm1, %v207_v37, -1e+30  ;;  %v161_v40 = vpop.f32.mrb[3].mxu0  ;;  %v209_v41 = vpop.f32.mrb[3].mxu1  ;;  %v1997_v42 = vsel %vm250_vm1, %v159_v38, -1e+30 }
  0xe5   :  { %285 = vmax.xlane.f32.xlu1 %v1989_v39  ;;  %283 = vmax.xlane.f32.xlu0 %v1985_v36  ;;  %428 = vst.msk [vmem:[#allocation3 + $0x8] sm:$0xff] %vm38_vm0, %v161_v40  ;;  %436 = vst.msk [vmem:[#allocation3 + $0x48] sm:$0xff] %vm38_vm0, %v209_v41 }
  0xe7   :  { %v165_v43 = vpop.f32.mrb[4].mxu0  ;;  %v213_v44 = vpop.f32.mrb[4].mxu1 }
  0xe8   :  { %v2001_v45 = vsel %vm250_vm1, %v165_v43, -1e+30  ;;  %v167_v46 = vpop.f32.mrb[5].mxu0  ;;  %v215_v47 = vpop.f32.mrb[5].mxu1  ;;  %v2009_v48 = vsel %vm250_vm1, %v213_v44, -1e+30 }
  0xe9   :  { %269 = vmax.xlane.f32.xlu0 %v1997_v42  ;;  %271 = vmax.xlane.f32.xlu1 %v2001_v45  ;;  %429 = vst.msk [vmem:[#allocation3 + $0x10] sm:$0xff] %vm38_vm0, %v167_v46  ;;  %437 = vst.msk [vmem:[#allocation3 + $0x50] sm:$0xff] %vm38_vm0, %v215_v47 }
  0xeb   :  { %v171_v49 = vpop.f32.mrb[6].mxu0  ;;  %v219_v50 = vpop.f32.mrb[6].mxu1 }
  0xec   :  { %v2013_v51 = vsel %vm250_vm1, %v171_v49, -1e+30  ;;  %v173_v52 = vpop.f32.mrb[7].mxu0  ;;  %v221_v53 = vpop.f32.mrb[7].mxu1  ;;  %v2021_v54 = vsel %vm250_vm1, %v219_v50, -1e+30 }
  0xed   :  { %287 = vmax.xlane.f32.xlu0 %v2009_v48  ;;  %273 = vmax.xlane.f32.xlu1 %v2013_v51  ;;  %430 = vst.msk [vmem:[#allocation3 + $0x18] sm:$0xff] %vm38_vm0, %v173_v52  ;;  %438 = vst.msk [vmem:[#allocation3 + $0x58] sm:$0xff] %vm38_vm0, %v221_v53 }
  0xef   :  { %v177_v55 = vpop.f32.mrb[8].mxu0  ;;  %v225_v56 = vpop.f32.mrb[8].mxu1 }
  0xf0   :  { %v2025_v57 = vsel %vm250_vm1, %v177_v55, -1e+30  ;;  %v179_v58 = vpop.f32.mrb[9].mxu0  ;;  %v227_v59 = vpop.f32.mrb[9].mxu1  ;;  %v2033_v60 = vsel %vm250_vm1, %v225_v56, -1e+30 }
  0xf1   :  { %289 = vmax.xlane.f32.xlu1 %v2021_v54  ;;  %275 = vmax.xlane.f32.xlu0 %v2025_v57  ;;  %431 = vst.msk [vmem:[#allocation3 + $0x20] sm:$0xff] %vm38_vm0, %v179_v58  ;;  %439 = vst.msk [vmem:[#allocation3 + $0x60] sm:$0xff] %vm38_vm0, %v227_v59 }
  0xf3   :  { %v183_v61 = vpop.f32.mrb[10].mxu0  ;;  %v231_v62 = vpop.f32.mrb[10].mxu1 }
  0xf4   :  { %v2037_v63 = vsel %vm250_vm1, %v183_v61, -1e+30  ;;  %v185_v0 = vpop.f32.mrb[11].mxu0  ;;  %v233_v1 = vpop.f32.mrb[11].mxu1  ;;  %v2045_v2 = vsel %vm250_vm1, %v231_v62, -1e+30 }
  0xf5   :  { %291 = vmax.xlane.f32.xlu0 %v2033_v60  ;;  %277 = vmax.xlane.f32.xlu1 %v2037_v63  ;;  %432 = vst.msk [vmem:[#allocation3 + $0x28] sm:$0xff] %vm38_vm0, %v185_v0  ;;  %440 = vst.msk [vmem:[#allocation3 + $0x68] sm:$0xff] %vm38_vm0, %v233_v1 }
  0xf7   :  { %v189_v3 = vpop.f32.mrb[12].mxu0  ;;  %v237_v4 = vpop.f32.mrb[12].mxu1 }
  0xf8   :  { %v2049_v5 = vsel %vm250_vm1, %v189_v3, -1e+30  ;;  %v191_v6 = vpop.f32.mrb[13].mxu0  ;;  %v239_v7 = vpop.f32.mrb[13].mxu1  ;;  %v2057_v8 = vsel %vm250_vm1, %v237_v4, -1e+30 }
  0xf9   :  { %293 = vmax.xlane.f32.xlu1 %v2045_v2  ;;  %279 = vmax.xlane.f32.xlu0 %v2049_v5  ;;  %433 = vst.msk [vmem:[#allocation3 + $0x30] sm:$0xff] %vm38_vm0, %v191_v6  ;;  %441 = vst.msk [vmem:[#allocation3 + $0x70] sm:$0xff] %vm38_vm0, %v239_v7 }
  0xfb   :  { %v195_v9 = vpop.f32.mrb[14].mxu0  ;;  %v243_v10 = vpop.f32.mrb[14].mxu1 }
  0xfc   :  { %v2061_v11 = vsel %vm250_vm1, %v195_v9, -1e+30  ;;  %v197_v12 = vpop.f32.mrb[15].mxu0  ;;  %v245_v13 = vpop.f32.mrb[15].mxu1  ;;  %v2069_v14 = vsel %vm250_vm1, %v243_v10, -1e+30 }
  0xfd   :  { %295 = vmax.xlane.f32.xlu0 %v2057_v8  ;;  %281 = vmax.xlane.f32.xlu1 %v2061_v11  ;;  %434 = vst.msk [vmem:[#allocation3 + $0x38] sm:$0xff] %vm38_vm0, %v197_v12  ;;  %442 = vst.msk [vmem:[#allocation3 + $0x78] sm:$0xff] %vm38_vm0, %v245_v13 }
 0x101   :  { %297 = vmax.xlane.f32.xlu1 %v2069_v14 }
 0x16e   :  { %v268_v15 = vpop.xlane.xlu0 %267 }
 0x16f   :  { %v299_v16 = vsub.f32 %v1978_v34, %v268_v15 }
 0x171   :  { %v315_v17 = vmul.f32 1.442695, %v299_v16 }
 0x172   :  { %v286_v18 = vpop.xlane.xlu1 %285  ;;  %v284_v19 = vpop.xlane.xlu0 %283 }
 0x173   :  { %1744 = vpow2.f32 %v315_v17  ;;  %v307_v20 = vsub.f32 %v1985_v36, %v284_v19  ;;  %v308_v22 = vsub.f32 %v1989_v39, %v286_v18 }
 0x175   :  { %v331_v21 = vmul.f32 1.442695, %v307_v20  ;;  %v333_v29 = vmul.f32 1.442695, %v308_v22 }
 0x176   :  { %v270_v23 = vpop.xlane.xlu0 %269  ;;  %v272_v24 = vpop.xlane.xlu1 %271 }
 0x177   :  { %v300_v25 = vsub.f32 %v1997_v42, %v270_v23  ;;  %v301_v26 = vsub.f32 %v2001_v45, %v272_v24  ;;  %1746 = vpow2.f32 %v331_v21 }
 0x179   :  { %v317_v27 = vmul.f32 1.442695, %v300_v25  ;;  %v319_v28 = vmul.f32 1.442695, %v301_v26 }
 0x17a   :  { %v288_v31 = vpop.xlane.xlu0 %287  ;;  %v274_v32 = vpop.xlane.xlu1 %273 }
 0x17b   :  { %1748 = vpow2.f32 %v317_v27  ;;  %v309_v33 = vsub.f32 %v2009_v48, %v288_v31  ;;  %v302_v34 = vsub.f32 %v2013_v51, %v274_v32 }
 0x17c   :  { %1750 = vpow2.f32 %v319_v28 }
 0x17d   :  { %v2079_v35 = vpop.eup %1744  ;;  %v335_v36 = vmul.f32 1.442695, %v309_v33  ;;  %1752 = vpow2.f32 %v333_v29  ;;  %v321_v39 = vmul.f32 1.442695, %v302_v34 }
 0x17e   :  { %v290_v37 = vpop.xlane.xlu1 %289  ;;  %v276_v38 = vpop.xlane.xlu0 %275  ;;  %347 = vadd.xlane.f32.xlu0 %v2079_v35 }
 0x17f   :  { %1754 = vpow2.f32 %v335_v36  ;;  %v310_v40 = vsub.f32 %v2021_v54, %v290_v37  ;;  %v303_v41 = vsub.f32 %v2025_v57, %v276_v38 }
 0x180   :  { %1756 = vpow2.f32 %v321_v39 }
 0x181   :  { %v323_v42 = vmul.f32 1.442695, %v303_v41  ;;  %v2084_v43 = vpop.eup %1746  ;;  %v337_v44 = vmul.f32 1.442695, %v310_v40 }
 0x182   :  { %v292_v45 = vpop.xlane.xlu0 %291  ;;  %v278_v46 = vpop.xlane.xlu1 %277  ;;  %363 = vadd.xlane.f32.xlu0 %v2084_v43 }
 0x183   :  { %v311_v47 = vsub.f32 %v2033_v60, %v292_v45  ;;  %v304_v48 = vsub.f32 %v2037_v63, %v278_v46  ;;  %1758 = vpow2.f32 %v323_v42 }
 0x184   :  { %1760 = vpow2.f32 %v337_v44 }
 0x185   :  { %v2089_v49 = vpop.eup %1748  ;;  %v339_v50 = vmul.f32 1.442695, %v311_v47  ;;  %v325_v54 = vmul.f32 1.442695, %v304_v48 }
 0x186   :  { %v2091_v51 = vpop.eup %1750  ;;  %v294_v52 = vpop.xlane.xlu1 %293  ;;  %349 = vadd.xlane.f32.xlu1 %v2089_v49 }
 0x187   :  { %v280_v53 = vpop.xlane.xlu0 %279  ;;  %1762 = vpow2.f32 %v339_v50  ;;  %v312_v55 = vsub.f32 %v2045_v2, %v294_v52  ;;  %351 = vadd.xlane.f32.xlu0 %v2091_v51  ;;  %v2097_v57 = vpop.eup %1752 }
 0x188   :  { %v305_v56 = vsub.f32 %v2049_v5, %v280_v53  ;;  %1764 = vpow2.f32 %v325_v54 }
 0x189   :  { %v2099_v58 = vpop.eup %1754  ;;  %v341_v60 = vmul.f32 1.442695, %v312_v55 }
 0x18a   :  { %v327_v59 = vmul.f32 1.442695, %v305_v56  ;;  %365 = vadd.xlane.f32.xlu1 %v2097_v57  ;;  %v282_v62 = vpop.xlane.xlu1 %281  ;;  %v2105_v1 = vpop.eup %1756 }
 0x18b   :  { %v296_v61 = vpop.xlane.xlu0 %295  ;;  %367 = vadd.xlane.f32.xlu0 %v2099_v58  ;;  %v306_v0 = vsub.f32 %v2061_v11, %v282_v62 }
 0x18c   :  { %v313_v63 = vsub.f32 %v2057_v8, %v296_v61  ;;  %1766 = vpow2.f32 %v327_v59 }
 0x18d   :  { %v2107_v3 = vpop.eup %1758  ;;  %1768 = vpow2.f32 %v341_v60  ;;  %v329_v5 = vmul.f32 1.442695, %v306_v0 }
 0x18e   :  { %v343_v2 = vmul.f32 1.442695, %v313_v63  ;;  %353 = vadd.xlane.f32.xlu1 %v2105_v1  ;;  %v298_v4 = vpop.xlane.xlu1 %297  ;;  %v2112_v7 = vpop.eup %1760 }
 0x18f   :  { %355 = vadd.xlane.f32.xlu0 %v2107_v3  ;;  %v314_v6 = vsub.f32 %v2069_v14, %v298_v4 }
 0x190   :  { %1770 = vpow2.f32 %v343_v2 }
 0x191   :  { %v2114_v8 = vpop.eup %1762  ;;  %1772 = vpow2.f32 %v329_v5  ;;  %v345_v9 = vmul.f32 1.442695, %v314_v6 }
 0x192   :  { %369 = vadd.xlane.f32.xlu1 %v2112_v7  ;;  %v2118_v10 = vpop.eup %1764 }
 0x193   :  { %371 = vadd.xlane.f32.xlu0 %v2114_v8  ;;  %1774 = vpow2.f32 %v345_v9 }
 0x196   :  { %v2120_v11 = vpop.eup %1766  ;;  %357 = vadd.xlane.f32.xlu1 %v2118_v10 }
 0x197   :  { %359 = vadd.xlane.f32.xlu0 %v2120_v11  ;;  %v2124_v12 = vpop.eup %1768 }
 0x19a   :  { %v2126_v13 = vpop.eup %1770  ;;  %373 = vadd.xlane.f32.xlu1 %v2124_v12 }
 0x19b   :  { %375 = vadd.xlane.f32.xlu0 %v2126_v13  ;;  %v2130_v14 = vpop.eup %1772 }
 0x19d   :  { %v2133_v15 = vpop.eup %1774 }
 0x19e   :  { %361 = vadd.xlane.f32.xlu1 %v2130_v14 }
 0x1a2   :  { %377 = vadd.xlane.f32.xlu1 %v2133_v15 }
 0x20b   :  { %v348_v16 = vpop.xlane.xlu0 %347 }
 0x20c   :  { %1776 = vrcp.f32 %v348_v16 }
 0x20f   :  { %v364_v17 = vpop.xlane.xlu0 %363 }
 0x210   :  { %1778 = vrcp.f32 %v364_v17 }
 0x213   :  { %v350_v18 = vpop.xlane.xlu1 %349 }
 0x214   :  { %v352_v19 = vpop.xlane.xlu0 %351  ;;  %1780 = vrcp.f32 %v350_v18 }
 0x215   :  { %1782 = vrcp.f32 %v352_v19 }
 0x216   :  { %v1777_v20 = vpop.eup %1776 }
 0x217   :  { %v395_v21 = vmul.f32 %v1777_v20, %v2079_v35  ;;  %v366_v22 = vpop.xlane.xlu1 %365 }
 0x218   :  { %v368_v23 = vpop.xlane.xlu0 %367  ;;  %1784 = vrcp.f32 %v366_v22 }
 0x219   :  { %411 = vst [vmem:[#allocation2] sm:$0xff] %v395_v21  ;;  %1786 = vrcp.f32 %v368_v23 }
 0x21a   :  { %v1779_v24 = vpop.eup %1778 }
 0x21b   :  { %v354_v25 = vpop.xlane.xlu1 %353  ;;  %v403_v26 = vmul.f32 %v1779_v24, %v2084_v43 }
 0x21c   :  { %v356_v27 = vpop.xlane.xlu0 %355  ;;  %1788 = vrcp.f32 %v354_v25 }
 0x21d   :  { %1790 = vrcp.f32 %v356_v27  ;;  %419 = vst [vmem:[#allocation2 + $0x40] sm:$0xff] %v403_v26 }
 0x21e   :  { %v1781_v28 = vpop.eup %1780 }
 0x21f   :  { %v1783_v29 = vpop.eup %1782  ;;  %v396_v31 = vmul.f32 %v1781_v28, %v2089_v49  ;;  %v370_v32 = vpop.xlane.xlu1 %369 }
 0x220   :  { %v397_v33 = vmul.f32 %v1783_v29, %v2091_v51  ;;  %v372_v34 = vpop.xlane.xlu0 %371  ;;  %1792 = vrcp.f32 %v370_v32 }
 0x221   :  { %412 = vst [vmem:[#allocation2 + $0x8] sm:$0xff] %v396_v31  ;;  %1794 = vrcp.f32 %v372_v34 }
 0x222   :  { %v1785_v35 = vpop.eup %1784  ;;  %413 = vst [vmem:[#allocation2 + $0x10] sm:$0xff] %v397_v33 }
 0x223   :  { %v1787_v36 = vpop.eup %1786  ;;  %v404_v37 = vmul.f32 %v1785_v35, %v2097_v57  ;;  %v358_v38 = vpop.xlane.xlu1 %357 }
 0x224   :  { %v405_v39 = vmul.f32 %v1787_v36, %v2099_v58  ;;  %v360_v40 = vpop.xlane.xlu0 %359  ;;  %1796 = vrcp.f32 %v358_v38 }
 0x225   :  { %420 = vst [vmem:[#allocation2 + $0x48] sm:$0xff] %v404_v37  ;;  %1798 = vrcp.f32 %v360_v40 }
 0x226   :  { %v1789_v41 = vpop.eup %1788  ;;  %421 = vst [vmem:[#allocation2 + $0x50] sm:$0xff] %v405_v39 }
 0x227   :  { %v1791_v42 = vpop.eup %1790  ;;  %v398_v43 = vmul.f32 %v1789_v41, %v2105_v1  ;;  %v374_v44 = vpop.xlane.xlu1 %373 }
 0x228   :  { %v399_v45 = vmul.f32 %v1791_v42, %v2107_v3  ;;  %v376_v46 = vpop.xlane.xlu0 %375  ;;  %1800 = vrcp.f32 %v374_v44 }
 0x229   :  { %414 = vst [vmem:[#allocation2 + $0x18] sm:$0xff] %v398_v43  ;;  %1802 = vrcp.f32 %v376_v46 }
 0x22a   :  { %v1793_v47 = vpop.eup %1792  ;;  %415 = vst [vmem:[#allocation2 + $0x20] sm:$0xff] %v399_v45 }
 0x22b   :  { %v1795_v48 = vpop.eup %1794  ;;  %v406_v49 = vmul.f32 %v1793_v47, %v2112_v7  ;;  %v362_v50 = vpop.xlane.xlu1 %361 }
 0x22c   :  { %v407_v51 = vmul.f32 %v1795_v48, %v2114_v8  ;;  %1804 = vrcp.f32 %v362_v50 }
 0x22d   :  { %422 = vst [vmem:[#allocation2 + $0x58] sm:$0xff] %v406_v49 }
 0x22e   :  { %v1797_v52 = vpop.eup %1796  ;;  %423 = vst [vmem:[#allocation2 + $0x60] sm:$0xff] %v407_v51 }
 0x22f   :  { %v1799_v53 = vpop.eup %1798  ;;  %v400_v54 = vmul.f32 %v1797_v52, %v2118_v10  ;;  %v378_v55 = vpop.xlane.xlu1 %377 }
 0x230   :  { %v401_v56 = vmul.f32 %v1799_v53, %v2120_v11  ;;  %1806 = vrcp.f32 %v378_v55 }
 0x231   :  { %416 = vst [vmem:[#allocation2 + $0x28] sm:$0xff] %v400_v54 }
 0x232   :  { %v1801_v57 = vpop.eup %1800  ;;  %417 = vst [vmem:[#allocation2 + $0x30] sm:$0xff] %v401_v56 }
 0x233   :  { %v1803_v58 = vpop.eup %1802  ;;  %v408_v59 = vmul.f32 %v1801_v57, %v2124_v12 }
 0x234   :  { %v409_v60 = vmul.f32 %v1803_v58, %v2126_v13 }
 0x235   :  { %424 = vst [vmem:[#allocation2 + $0x68] sm:$0xff] %v408_v59 }
 0x236   :  { %v1805_v61 = vpop.eup %1804  ;;  %425 = vst [vmem:[#allocation2 + $0x70] sm:$0xff] %v409_v60 }
 0x237   :  { %v402_v62 = vmul.f32 %v1805_v61, %v2130_v14 }
 0x239   :  { %418 = vst [vmem:[#allocation2 + $0x38] sm:$0xff] %v402_v62 }
 0x23a   :  { %v1807_v63 = vpop.eup %1806 }
 0x23b   :  { %v410_v0 = vmul.f32 %v1807_v63, %v2133_v15 }
 0x23d   :  { %426 = vst [vmem:[#allocation2 + $0x78] sm:$0xff] %v410_v0 }
 0x23e LB: > { %s2158_s1 = sshll.u32 %s1846_s0, 6  ;;  %v694_v21 = vld [vmem:[%s2326_s2] sm:$0xff]  ;;  %v695_v22 = vld [vmem:[%s2326_s2 + $0x8] sm:$0xff]  ;;  %v696_v23 = vld [vmem:[%s2326_s2 + $0x10] sm:$0xff]  ;;  %vm500_vm2 = vcmask 523264   ;;  %s448_s0 = sadd.s32 1, %s1846_s0   ;;  %s1846_s0 = sphi %s2152_s0, %s448_s0  }
 0x23f   : > { %s2161_s5 = scalar_lea.vmem [#allocation2], %s2158_s1  ;;  %s459_s6 = scalar_lea.vmem [#allocation3], %s2158_s1  ;;  %v1642_v24 = vpack.c.bf16 %v695_v22, %v694_v21  ;;  %v697_v25 = vld [vmem:[%s2326_s2 + $0x18] sm:$0xff]  ;;  %vm2228_vm3 = vmpackc.low %vm38_vm0, %vm38_vm0 }
 0x240   : > { %v2166_v3 = vld [vmem:[%s459_s6] sm:$0xff]  ;;  %v2168_v4 = vld [vmem:[%s459_s6 + $0x8] sm:$0xff]  ;;  %v2170_v5 = vld [vmem:[%s459_s6 + $0x10] sm:$0xff]  ;;  %v1646_v26 = vpack.c.bf16 %v697_v25, %v696_v23  ;;  %s1269_s17 = scalar_lea.vmem %s2327_s3, %s2158_s1  ;;  %p445_p0 = scmp.ge.s32.totalorder %s448_s0, 2  }
 0x241   : > { %v2172_v6 = vld [vmem:[%s459_s6 + $0x18] sm:$0xff]  ;;  %v1626_v7 = vpack.c.bf16 %v2168_v4, %v2166_v3  ;;  %v2178_v9 = vld [vmem:[%s459_s6 + $0x20] sm:$0xff]  ;;  %v2180_v10 = vld [vmem:[%s459_s6 + $0x28] sm:$0xff]  ;;  %1643 = vmatprep.subr.bf16.mxu1 %v1642_v24 }
 0x242   : > { %v1630_v8 = vpack.c.bf16 %v2172_v6, %v2170_v5  ;;  %v1634_v12 = vpack.c.bf16 %v2180_v10, %v2178_v9  ;;  %v2185_v13 = vld [vmem:[%s459_s6 + $0x30] sm:$0xff]  ;;  %v2187_v14 = vld [vmem:[%s459_s6 + $0x38] sm:$0xff]  ;;  %1645 = vmatpush3.bf16.msra.mxu1 %v1642_v24 }
 0x243   : > { %1627 = vmatprep.subr.bf16.mxu0 %v1626_v7  ;;  %v1638_v16 = vpack.c.bf16 %v2187_v14, %v2185_v13  ;;  %1647 = vmatprep.subr.bf16.mxu1 %v1646_v26 }
 0x244   : > { %v451_v1 = vld [vmem:[%s2161_s5] sm:$0xff]  ;;  %v452_v2 = vld [vmem:[%s2161_s5 + $0x8] sm:$0xff]  ;;  %v453_v11 = vld [vmem:[%s2161_s5 + $0x10] sm:$0xff]  ;;  %1629 = vmatpush3.bf16.msra.mxu0 %v1626_v7 }
 0x245   : > { %468 = vxpose.xlu0.b32.start [1/8] (short) %v451_v1, 128  ;;  %1631 = vmatprep.subr.bf16.mxu0 %v1630_v8  ;;  %v454_v15 = vld [vmem:[%s2161_s5 + $0x18] sm:$0xff]  ;;  %v455_v17 = vld [vmem:[%s2161_s5 + $0x20] sm:$0xff]  ;;  %v456_v18 = vld [vmem:[%s2161_s5 + $0x28] sm:$0xff] }
 0x246   : > { %v457_v19 = vld [vmem:[%s2161_s5 + $0x30] sm:$0xff]  ;;  %v458_v20 = vld [vmem:[%s2161_s5 + $0x38] sm:$0xff]  ;;  %1649 = vmatpush3.bf16.msra.mxu1 %v1646_v26 }
 0x248   : > { %1633 = vmatpush3.bf16.msra.mxu0 %v1630_v8 }
 0x249   : > { %469 = vxpose.xlu0.b32.cont [2/8] (short) %v452_v2, 128  ;;  %1635 = vmatprep.subr.bf16.mxu0 %v1634_v12 }
 0x24c   : > { %1637 = vmatpush3.bf16.msra.mxu0 %v1634_v12 }
 0x24d   : > { %470 = vxpose.xlu0.b32.cont [3/8] (short) %v453_v11, 128  ;;  %1639 = vmatprep.subr.bf16.mxu0 %v1638_v16 }
 0x250   : > { %1641 = vmatpush3.bf16.msra.mxu0 %v1638_v16 }
 0x251   : > { %471 = vxpose.xlu0.b32.cont [4/8] (short) %v454_v15, 128 }
 0x255   : > { %472 = vxpose.xlu0.b32.cont [5/8] (short) %v455_v17, 128 }
 0x259   : > { %473 = vxpose.xlu0.b32.cont [6/8] (short) %v456_v18, 128 }
 0x25d   : > { %474 = vxpose.xlu0.b32.cont [7/8] (short) %v457_v19, 128 }
 0x261   : > { %475 = vxpose.xlu0.b32.end [8/8] (short) %v458_v20, 128 }
 0x2c5   : > { %v484_v27 = vpop.trf.xlu0 }
 0x2c6   : > { %1474 = vmatprep.mubr.msk.f32.mxu0 %vm500_vm2, %v484_v27 }
 0x2c9   : > { %v485_v28 = vpop.trf.xlu0 }
 0x2ca   : > { %1475 = vmatmul.mubr.msk.f32.vlgmr.msra.gmra.mrb[0].mxu0 %vm500_vm2, %v485_v28 }
 0x2cd   : > { %v486_v29 = vpop.trf.xlu0 }
 0x2ce   : > { %1477 = vmatprep.mubr.msk.f32.mxu0 %vm500_vm2, %v486_v29 }
 0x2d1   : > { %v487_v31 = vpop.trf.xlu0 }
 0x2d2   : > { %1478 = vmatmul.mubr.msk.f32.gmra.mrb[2].mxu0 %vm500_vm2, %v487_v31 }
 0x2d5   : > { %v488_v32 = vpop.trf.xlu0 }
 0x2d6   : > { %1480 = vmatprep.mubr.msk.f32.mxu0 %vm500_vm2, %v488_v32 }
 0x2d9   : > { %v489_v33 = vpop.trf.xlu0 }
 0x2da   : > { %1481 = vmatmul.mubr.msk.f32.gmra.mrb[4].mxu0 %vm500_vm2, %v489_v33 }
 0x2dd   : > { %v490_v34 = vpop.trf.xlu0 }
 0x2de   : > { %1483 = vmatprep.mubr.msk.f32.mxu0 %vm500_vm2, %v490_v34 }
 0x2e1   : > { %v491_v35 = vpop.trf.xlu0 }
 0x2e2   : > { %1484 = vmatmul.mubr.msk.f32.gmra.mrb[6].mxu0 %vm500_vm2, %v491_v35 }
 0x2e5   : > { %v492_v36 = vpop.trf.xlu0 }
 0x2e6   : > { %1486 = vmatprep.mubr.msk.f32.mxu0 %vm500_vm2, %v492_v36 }
 0x2e9   : > { %v493_v37 = vpop.trf.xlu0 }
 0x2ea   : > { %1487 = vmatmul.mubr.msk.f32.gmra.mrb[8].mxu0 %vm500_vm2, %v493_v37 }
 0x2ed   : > { %v494_v38 = vpop.trf.xlu0 }
 0x2ee   : > { %1489 = vmatprep.mubr.msk.f32.mxu0 %vm500_vm2, %v494_v38 }
 0x2f1   : > { %v495_v39 = vpop.trf.xlu0 }
 0x2f2   : > { %1490 = vmatmul.mubr.msk.f32.gmra.mrb[10].mxu0 %vm500_vm2, %v495_v39 }
 0x2f5   : > { %v496_v40 = vpop.trf.xlu0 }
 0x2f6   : > { %1492 = vmatprep.mubr.msk.f32.mxu0 %vm500_vm2, %v496_v40 }
 0x2f9   : > { %v497_v41 = vpop.trf.xlu0 }
 0x2fa   : > { %1493 = vmatmul.mubr.msk.f32.gmra.mrb[12].mxu0 %vm500_vm2, %v497_v41 }
 0x2fd   : > { %v498_v42 = vpop.trf.xlu0 }
 0x2fe   : > { %1495 = vmatprep.mubr.msk.f32.mxu0 %vm500_vm2, %v498_v42 }
 0x301   : > { %v499_v43 = vpop.trf.xlu0 }
 0x302   : > { %1496 = vmatmul.mubr.msk.f32.gmra.mrb[14].mxu0 %vm500_vm2, %v499_v43 }
 0x39d   : > { %v1476_v44 = vpop.f32.mrb[0].mxu0 }
 0x39e   : > { %v892_v45 = vmul.f32 0.17677669, %v1476_v44  ;;  %v615_v46 = vpop.f32.mrb[1].mxu0 }
 0x39f   : > { %v891_v47 = vmul.f32 0.17677669, %v615_v46  ;;  %1506 = vmatprep.mubr.msk.f32.mxu1 %vm38_vm0, %v615_v46 }
 0x3a0   : > { %1507 = vmatmul.mubr.msk.f32.vlgmr.msra.gmra.mrb[0].mxu1 %vm38_vm0, %v1476_v44 }
 0x3a1   : > { %v1650_v49 = vpack.c.bf16 %v892_v45, %v891_v47 }
 0x3a3   : > { %1652 = vmatprep.subr.msk.bf16.mxu1 %vm2228_vm3, %v1650_v49 }
 0x3a4   : > { %1655 = vmatpush3.bf16.xpose.msk.msra.mxu1 %vm2228_vm3, %v1650_v49 }
 0x3a5   : > { %v1479_v50 = vpop.f32.mrb[2].mxu0 }
 0x3a6   : > { %v894_v51 = vmul.f32 0.17677669, %v1479_v50  ;;  %v625_v52 = vpop.f32.mrb[3].mxu0 }
 0x3a7   : > { %v893_v53 = vmul.f32 0.17677669, %v625_v52  ;;  %1509 = vmatprep.mubr.msk.f32.mxu1 %vm38_vm0, %v625_v52 }
 0x3a8   : > { %1510 = vmatmul.mubr.msk.f32.gmra.mrb[2].mxu1 %vm38_vm0, %v1479_v50 }
 0x3a9   : > { %v1656_v54 = vpack.c.bf16 %v894_v51, %v893_v53 }
 0x3ab   : > { %1658 = vmatprep.subr.msk.bf16.mxu1 %vm2228_vm3, %v1656_v54 }
 0x3ac   : > { %1661 = vmatpush3.bf16.xpose.msk.msra.mxu1 %vm2228_vm3, %v1656_v54 }
 0x3ad   : > { %v1482_v55 = vpop.f32.mrb[4].mxu0 }
 0x3ae   : > { %v896_v56 = vmul.f32 0.17677669, %v1482_v55  ;;  %v635_v57 = vpop.f32.mrb[5].mxu0 }
 0x3af   : > { %v895_v58 = vmul.f32 0.17677669, %v635_v57  ;;  %1512 = vmatprep.mubr.msk.f32.mxu1 %vm38_vm0, %v635_v57 }
 0x3b0   : > { %1513 = vmatmul.mubr.msk.f32.gmra.mrb[4].mxu1 %vm38_vm0, %v1482_v55 }
 0x3b1   : > { %v1662_v59 = vpack.c.bf16 %v896_v56, %v895_v58 }
 0x3b3   : > { %1664 = vmatprep.subr.msk.bf16.mxu1 %vm2228_vm3, %v1662_v59 }
 0x3b4   : > { %1667 = vmatpush3.bf16.xpose.msk.msra.mxu1 %vm2228_vm3, %v1662_v59 }
 0x3b5   : > { %v1485_v60 = vpop.f32.mrb[6].mxu0 }
 0x3b6   : > { %v898_v61 = vmul.f32 0.17677669, %v1485_v60  ;;  %v645_v62 = vpop.f32.mrb[7].mxu0 }
 0x3b7   : > { %v897_v63 = vmul.f32 0.17677669, %v645_v62  ;;  %1515 = vmatprep.mubr.msk.f32.mxu1 %vm38_vm0, %v645_v62 }
 0x3b8   : > { %1516 = vmatmul.mubr.msk.f32.gmra.mrb[6].mxu1 %vm38_vm0, %v1485_v60 }
 0x3b9   : > { %v1668_v0 = vpack.c.bf16 %v898_v61, %v897_v63 }
 0x3bb   : > { %1670 = vmatprep.subr.msk.bf16.mxu1 %vm2228_vm3, %v1668_v0 }
 0x3bc   : > { %1673 = vmatpush3.bf16.xpose.msk.msra.mxu1 %vm2228_vm3, %v1668_v0 }
 0x3bd   : > { %v1488_v1 = vpop.f32.mrb[8].mxu0 }
 0x3be   : > { %v900_v2 = vmul.f32 0.17677669, %v1488_v1  ;;  %v655_v7 = vpop.f32.mrb[9].mxu0 }
 0x3bf   : > { %v899_v8 = vmul.f32 0.17677669, %v655_v7  ;;  %1518 = vmatprep.mubr.msk.f32.mxu1 %vm38_vm0, %v655_v7 }
 0x3c0   : > { %1519 = vmatmul.mubr.msk.f32.gmra.mrb[8].mxu1 %vm38_vm0, %v1488_v1 }
 0x3c1   : > { %v1674_v11 = vpack.c.bf16 %v900_v2, %v899_v8 }
 0x3c3   : > { %1676 = vmatprep.subr.msk.bf16.mxu1 %vm2228_vm3, %v1674_v11 }
 0x3c4   : > { %1679 = vmatpush3.bf16.xpose.msk.msra.mxu1 %vm2228_vm3, %v1674_v11 }
 0x3c5   : > { %v1491_v12 = vpop.f32.mrb[10].mxu0 }
 0x3c6   : > { %v902_v15 = vmul.f32 0.17677669, %v1491_v12  ;;  %v665_v16 = vpop.f32.mrb[11].mxu0 }
 0x3c7   : > { %v901_v17 = vmul.f32 0.17677669, %v665_v16  ;;  %1521 = vmatprep.mubr.msk.f32.mxu1 %vm38_vm0, %v665_v16 }
 0x3c8   : > { %1522 = vmatmul.mubr.msk.f32.gmra.mrb[10].mxu1 %vm38_vm0, %v1491_v12 }
 0x3c9   : > { %v1680_v18 = vpack.c.bf16 %v902_v15, %v901_v17 }
 0x3cb   : > { %1682 = vmatprep.subr.msk.bf16.mxu1 %vm2228_vm3, %v1680_v18 }
 0x3cc   : > { %1685 = vmatpush3.bf16.xpose.msk.msra.mxu1 %vm2228_vm3, %v1680_v18 }
 0x3cd   : > { %v1494_v19 = vpop.f32.mrb[12].mxu0 }
 0x3ce   : > { %v904_v20 = vmul.f32 0.17677669, %v1494_v19  ;;  %v675_v21 = vpop.f32.mrb[13].mxu0 }
 0x3cf   : > { %v903_v22 = vmul.f32 0.17677669, %v675_v21  ;;  %1524 = vmatprep.mubr.msk.f32.mxu1 %vm38_vm0, %v675_v21 }
 0x3d0   : > { %1525 = vmatmul.mubr.msk.f32.gmra.mrb[12].mxu1 %vm38_vm0, %v1494_v19 }
 0x3d1   : > { %v1686_v23 = vpack.c.bf16 %v904_v20, %v903_v22 }
 0x3d3   : > { %1688 = vmatprep.subr.msk.bf16.mxu1 %vm2228_vm3, %v1686_v23 }
 0x3d4   : > { %1691 = vmatpush3.bf16.xpose.msk.msra.mxu1 %vm2228_vm3, %v1686_v23 }
 0x3d5   : > { %v1497_v24 = vpop.f32.mrb[14].mxu0 }
 0x3d6   : > { %v906_v25 = vmul.f32 0.17677669, %v1497_v24  ;;  %v685_v26 = vpop.f32.mrb[15].mxu0 }
 0x3d7   : > { %v905_v27 = vmul.f32 0.17677669, %v685_v26  ;;  %1527 = vmatprep.mubr.msk.f32.mxu1 %vm38_vm0, %v685_v26 }
 0x3d8   : > { %1528 = vmatmul.mubr.msk.f32.gmra.mrb[14].mxu1 %vm38_vm0, %v1497_v24 }
 0x3d9   : > { %v1692_v28 = vpack.c.bf16 %v906_v25, %v905_v27  ;;  %1562 = vmatprep.mubr.msk.f32.mxu1 %vm38_vm0, %v2166_v3 }
 0x3db   : > { %1694 = vmatprep.subr.msk.bf16.mxu1 %vm2228_vm3, %v1692_v28 }
 0x3dc   : > { %1697 = vmatpush3.bf16.xpose.msk.msra.mxu1 %vm2228_vm3, %v1692_v28 }
 0x3e3   : > { %1563 = vmatmul.mubr.msk.f32.vlgmr.msra.gmra.mrb[16].mxu1 %vm38_vm0, %v2168_v4 }
 0x3e4   : > { %1565 = vmatprep.mubr.msk.f32.mxu1 %vm38_vm0, %v2170_v5 }
 0x3e7   : > { %1566 = vmatmul.mubr.msk.f32.gmra.mrb[18].mxu1 %vm38_vm0, %v2172_v6 }
 0x3e8   : > { %1568 = vmatprep.mubr.msk.f32.mxu1 %vm38_vm0, %v2178_v9 }
 0x3eb   : > { %1569 = vmatmul.mubr.msk.f32.gmra.mrb[20].mxu1 %vm38_vm0, %v2180_v10 }
 0x3ec   : > { %1571 = vmatprep.mubr.msk.f32.mxu1 %vm38_vm0, %v2185_v13 }
 0x3ef   : > { %1572 = vmatmul.mubr.msk.f32.gmra.mrb[22].mxu1 %vm38_vm0, %v2187_v14 }
 0x473   : > { %v1508_v3 = vpop.f32.mrb[0].mxu1 }
 0x474   : > { %v812_v4 = vpop.f32.mrb[1].mxu1 }
 0x475   : > { %v1698_v29 = vpack.c.bf16 %v1508_v3, %v812_v4 }
 0x477   : > { %1699 = vmatprep.subr.bf16.mxu0 %v1698_v29 }
 0x478   : > { %1701 = vmatpush3.bf16.msra.mxu0 %v1698_v29 }
 0x47b   : > { %v1511_v5 = vpop.f32.mrb[2].mxu1 }
 0x47c   : > { %v822_v31 = vpop.f32.mrb[3].mxu1 }
 0x47d   : > { %v1702_v6 = vpack.c.bf16 %v1511_v5, %v822_v31 }
 0x47f   : > { %1703 = vmatprep.subr.bf16.mxu0 %v1702_v6 }
 0x480   : > { %1705 = vmatpush3.bf16.msra.mxu0 %v1702_v6 }
 0x483   : > { %v1514_v9 = vpop.f32.mrb[4].mxu1 }
 0x484   : > { %v832_v32 = vpop.f32.mrb[5].mxu1 }
 0x485   : > { %v1706_v33 = vpack.c.bf16 %v1514_v9, %v832_v32 }
 0x487   : > { %1707 = vmatprep.subr.bf16.mxu0 %v1706_v33 }
 0x488   : > { %1709 = vmatpush3.bf16.msra.mxu0 %v1706_v33 }
 0x48b   : > { %v1517_v10 = vpop.f32.mrb[6].mxu1 }
 0x48c   : > { %v842_v13 = vpop.f32.mrb[7].mxu1 }
 0x48d   : > { %v1710_v34 = vpack.c.bf16 %v1517_v10, %v842_v13 }
 0x48f   : > { %1711 = vmatprep.subr.bf16.mxu0 %v1710_v34 }
 0x490   : > { %1713 = vmatpush3.bf16.msra.mxu0 %v1710_v34 }
 0x493   : > { %v1520_v14 = vpop.f32.mrb[8].mxu1 }
 0x494   : > { %v852_v35 = vpop.f32.mrb[9].mxu1 }
 0x495   : > { %v1714_v36 = vpack.c.bf16 %v1520_v14, %v852_v35 }
 0x497   : > { %1715 = vmatprep.subr.bf16.mxu0 %v1714_v36 }
 0x498   : > { %1717 = vmatpush3.bf16.msra.mxu0 %v1714_v36 }
 0x49b   : > { %v1523_v37 = vpop.f32.mrb[10].mxu1 }
 0x49c   : > { %v862_v38 = vpop.f32.mrb[11].mxu1 }
 0x49d   : > { %v1718_v39 = vpack.c.bf16 %v1523_v37, %v862_v38 }
 0x49f   : > { %1719 = vmatprep.subr.bf16.mxu0 %v1718_v39 }
 0x4a0   : > { %1721 = vmatpush3.bf16.msra.mxu0 %v1718_v39 }
 0x4a3   : > { %v1526_v40 = vpop.f32.mrb[12].mxu1 }
 0x4a4   : > { %v872_v41 = vpop.f32.mrb[13].mxu1 }
 0x4a5   : > { %v1722_v42 = vpack.c.bf16 %v1526_v40, %v872_v41 }
 0x4a7   : > { %1723 = vmatprep.subr.bf16.mxu0 %v1722_v42 }
 0x4a8   : > { %1725 = vmatpush3.bf16.msra.mxu0 %v1722_v42 }
 0x4ab   : > { %v1529_v43 = vpop.f32.mrb[14].mxu1 }
 0x4ac   : > { %v882_v44 = vpop.f32.mrb[15].mxu1 }
 0x4ad   : > { %v1726_v45 = vpack.c.bf16 %v1529_v43, %v882_v44 }
 0x4af   : > { %1727 = vmatprep.subr.bf16.mxu0 %v1726_v45 }
 0x4b0   : > { %1729 = vmatpush3.bf16.msra.mxu0 %v1726_v45 }
 0x4b6   : > { %v1564_v46 = vpop.f32.mrb[16].mxu1 }
 0x4b7   : > { %v1045_v47 = vpop.f32.mrb[17].mxu1  ;;  %v1085_v48 = vsel %vm250_vm1, %v1564_v46, -1e+30 }
 0x4b8   : > { %1094 = vmax.xlane.f32.xlu1 %v1085_v48  ;;  %v1084_v50 = vsel %vm250_vm1, %v1045_v47, -1e+30 }
 0x4ba   : > { %v1567_v49 = vpop.f32.mrb[18].mxu1 }
 0x4bb   : > { %v1055_v51 = vpop.f32.mrb[19].mxu1  ;;  %v1087_v52 = vsel %vm250_vm1, %v1567_v49, -1e+30 }
 0x4bc   : > { %1092 = vmax.xlane.f32.xlu1 %v1084_v50  ;;  %v1086_v56 = vsel %vm250_vm1, %v1055_v51, -1e+30 }
 0x4be   : > { %v1570_v53 = vpop.f32.mrb[20].mxu1 }
 0x4bf   : > { %v1065_v54 = vpop.f32.mrb[21].mxu1  ;;  %v1089_v58 = vsel %vm250_vm1, %v1570_v53, -1e+30 }
 0x4c0   : > { %1098 = vmax.xlane.f32.xlu1 %v1087_v52  ;;  %v1088_v59 = vsel %vm250_vm1, %v1065_v54, -1e+30 }
 0x4c2   : > { %v1573_v55 = vpop.f32.mrb[22].mxu1 }
 0x4c3   : > { %v1075_v57 = vpop.f32.mrb[23].mxu1  ;;  %v1091_v61 = vsel %vm250_vm1, %v1573_v55, -1e+30 }
 0x4c4   : > { %1096 = vmax.xlane.f32.xlu1 %v1086_v56  ;;  %v1090_v60 = vsel %vm250_vm1, %v1075_v57, -1e+30 }
 0x4c8   : > { %1102 = vmax.xlane.f32.xlu1 %v1089_v58 }
 0x4cc   : > { %1100 = vmax.xlane.f32.xlu1 %v1088_v59 }
 0x4d0   : > { %1104 = vmax.xlane.f32.xlu1 %v1090_v60 }
 0x4d4   : > { %1106 = vmax.xlane.f32.xlu1 %v1091_v61 }
 0x545   : > { %v1095_v62 = vpop.xlane.xlu1 %1094 }
 0x546   : > { %v1109_v63 = vsub.f32 %v1085_v48, %v1095_v62 }
 0x548   : > { %v1118_v0 = vmul.f32 1.442695, %v1109_v63 }
 0x549   : > { %v1093_v1 = vpop.xlane.xlu1 %1092 }
 0x54a   : > { %1808 = vpow2.f32 %v1118_v0  ;;  %v1108_v2 = vsub.f32 %v1084_v50, %v1093_v1 }
 0x54c   : > { %v1116_v7 = vmul.f32 1.442695, %v1108_v2 }
 0x54d   : > { %v1099_v8 = vpop.xlane.xlu1 %1098 }
 0x54e   : > { %1810 = vpow2.f32 %v1116_v7  ;;  %v1111_v11 = vsub.f32 %v1087_v52, %v1099_v8 }
 0x550   : > { %v1122_v12 = vmul.f32 1.442695, %v1111_v11 }
 0x551   : > { %v1097_v15 = vpop.xlane.xlu1 %1096 }
 0x552   : > { %1812 = vpow2.f32 %v1122_v12  ;;  %v1110_v16 = vsub.f32 %v1086_v56, %v1097_v15 }
 0x554   : > { %v1809_v17 = vpop.eup %1808  ;;  %v1120_v18 = vmul.f32 1.442695, %v1110_v16 }
 0x555   : > { %v1103_v19 = vpop.xlane.xlu1 %1102  ;;  %1134 = vadd.xlane.f32.xlu1 %v1809_v17 }
 0x556   : > { %1814 = vpow2.f32 %v1120_v18  ;;  %v1113_v20 = vsub.f32 %v1089_v58, %v1103_v19 }
 0x558   : > { %v1811_v21 = vpop.eup %1810  ;;  %v1126_v22 = vmul.f32 1.442695, %v1113_v20 }
 0x559   : > { %1132 = vadd.xlane.f32.xlu0 %v1811_v21  ;;  %v1101_v23 = vpop.xlane.xlu1 %1100 }
 0x55a   : > { %1816 = vpow2.f32 %v1126_v22  ;;  %v1112_v24 = vsub.f32 %v1088_v59, %v1101_v23 }
 0x55c   : > { %v1813_v25 = vpop.eup %1812  ;;  %v1124_v26 = vmul.f32 1.442695, %v1112_v24 }
 0x55d   : > { %1138 = vadd.xlane.f32.xlu1 %v1813_v25  ;;  %v1105_v27 = vpop.xlane.xlu1 %1104 }
 0x55e   : > { %1818 = vpow2.f32 %v1124_v26  ;;  %v1114_v28 = vsub.f32 %v1090_v60, %v1105_v27 }
 0x560   : > { %v1815_v3 = vpop.eup %1814  ;;  %v1128_v4 = vmul.f32 1.442695, %v1114_v28 }
 0x561   : > { %1136 = vadd.xlane.f32.xlu1 %v1815_v3  ;;  %v1107_v29 = vpop.xlane.xlu1 %1106 }
 0x562   : > { %1820 = vpow2.f32 %v1128_v4  ;;  %v1115_v5 = vsub.f32 %v1091_v61, %v1107_v29 }
 0x564   : > { %v1817_v31 = vpop.eup %1816  ;;  %v1130_v6 = vmul.f32 1.442695, %v1115_v5 }
 0x565   : > { %1142 = vadd.xlane.f32.xlu1 %v1817_v31 }
 0x566   : > { %1822 = vpow2.f32 %v1130_v6 }
 0x568   : > { %v1819_v9 = vpop.eup %1818 }
 0x569   : > { %1140 = vadd.xlane.f32.xlu1 %v1819_v9 }
 0x56c   : > { %v1821_v32 = vpop.eup %1820 }
 0x56d   : > { %1144 = vadd.xlane.f32.xlu1 %v1821_v32 }
 0x570   : > { %v1823_v33 = vpop.eup %1822 }
 0x571   : > { %1146 = vadd.xlane.f32.xlu1 %v1823_v33 }
 0x5e2   : > { %v1135_v10 = vpop.xlane.xlu1 %1134 }
 0x5e3   : > { %1824 = vrcp.f32 %v1135_v10 }
 0x5e6   : > { %v1133_v13 = vpop.xlane.xlu0 %1132 }
 0x5e7   : > { %1826 = vrcp.f32 %v1133_v13 }
 0x5ea   : > { %v1139_v34 = vpop.xlane.xlu1 %1138 }
 0x5eb   : > { %1828 = vrcp.f32 %v1139_v34 }
 0x5ed   : > { %v1825_v35 = vpop.eup %1824 }
 0x5ee   : > { %v1137_v14 = vpop.xlane.xlu1 %1136  ;;  %v1157_v39 = vmul.f32 %v1825_v35, %v1809_v17 }
 0x5ef   : > { %1830 = vrcp.f32 %v1137_v14 }
 0x5f1   : > { %v1827_v36 = vpop.eup %1826 }
 0x5f2   : > { %v1143_v37 = vpop.xlane.xlu1 %1142  ;;  %v1156_v38 = vmul.f32 %v1827_v36, %v1811_v21 }
 0x5f3   : > { %1832 = vrcp.f32 %v1143_v37 }
 0x5f4   : > { %1606 = vmatprep.mubr.f32.mxu0 %v1156_v38 }
 0x5f5   : > { %1607 = vmatmul.mubr.f32.vlgmr.msra.gmra.mrb[16].mxu0 %v1157_v39  ;;  %v1829_v41 = vpop.eup %1828 }
 0x5f6   : > { %v1141_v40 = vpop.xlane.xlu1 %1140  ;;  %v1159_v45 = vmul.f32 %v1829_v41, %v1813_v25 }
 0x5f7   : > { %1834 = vrcp.f32 %v1141_v40 }
 0x5f9   : > { %v1831_v42 = vpop.eup %1830 }
 0x5fa   : > { %v1145_v43 = vpop.xlane.xlu1 %1144  ;;  %v1158_v44 = vmul.f32 %v1831_v42, %v1815_v3 }
 0x5fb   : > { %1836 = vrcp.f32 %v1145_v43 }
 0x5fc   : > { %1609 = vmatprep.mubr.f32.mxu0 %v1158_v44 }
 0x5fd   : > { %1610 = vmatmul.mubr.f32.gmra.mrb[18].mxu0 %v1159_v45  ;;  %v1833_v47 = vpop.eup %1832 }
 0x5fe   : > { %v1147_v46 = vpop.xlane.xlu1 %1146  ;;  %v1161_v50 = vmul.f32 %v1833_v47, %v1817_v31 }
 0x5ff   : > { %1838 = vrcp.f32 %v1147_v46 }
 0x601   : > { %v1835_v48 = vpop.eup %1834 }
 0x602   : > { %v1160_v49 = vmul.f32 %v1835_v48, %v1819_v9 }
 0x604   : > { %1612 = vmatprep.mubr.f32.mxu0 %v1160_v49 }
 0x605   : > { %v1837_v51 = vpop.eup %1836  ;;  %1613 = vmatmul.mubr.f32.gmra.mrb[20].mxu0 %v1161_v50 }
 0x606   : > { %v1162_v52 = vmul.f32 %v1837_v51, %v1821_v32 }
 0x608   : > { %1615 = vmatprep.mubr.f32.mxu0 %v1162_v52 }
 0x609   : > { %v1839_v53 = vpop.eup %1838 }
 0x60a   : > { %v1163_v54 = vmul.f32 %v1839_v53, %v1823_v33 }
 0x60c   : > { %1616 = vmatmul.mubr.f32.gmra.mrb[22].mxu0 %v1163_v54 }
 0x6c8   : > { %v1608_v55 = vpop.f32.mrb[16].mxu0 }
 0x6c9   : > { %1271 = vst.msk [vmem:[%s1269_s17 + $0x8] sm:$0xff] %vm38_vm0, %v1608_v55  ;;  %v1230_v56 = vpop.f32.mrb[17].mxu0 }
 0x6ca   : > { %1270 = vst.msk [vmem:[%s1269_s17] sm:$0xff] %vm38_vm0, %v1230_v56 }
 0x6d0   : > { %v1611_v57 = vpop.f32.mrb[18].mxu0 }
 0x6d1   : > { %1273 = vst.msk [vmem:[%s1269_s17 + $0x18] sm:$0xff] %vm38_vm0, %v1611_v57  ;;  %v1240_v58 = vpop.f32.mrb[19].mxu0 }
 0x6d2   : > { %1272 = vst.msk [vmem:[%s1269_s17 + $0x10] sm:$0xff] %vm38_vm0, %v1240_v58 }
 0x6d8   : > { %v1614_v59 = vpop.f32.mrb[20].mxu0 }
 0x6d9   : > { %1275 = vst.msk [vmem:[%s1269_s17 + $0x28] sm:$0xff] %vm38_vm0, %v1614_v59  ;;  %v1250_v60 = vpop.f32.mrb[21].mxu0 }
 0x6da   : > { %1274 = vst.msk [vmem:[%s1269_s17 + $0x20] sm:$0xff] %vm38_vm0, %v1250_v60 }
 0x6db   :  { %447 = sbr.rel (!%p445_p0) target bundleno = 574 (0x23e), region = 42 }
 0x6df   : > { %v1617_v61 = vpop.f32.mrb[22].mxu0 }
 0x6e0   : > { %1277 = vst.msk [vmem:[%s1269_s17 + $0x38] sm:$0xff] %vm38_vm0, %v1617_v61  ;;  %v1260_v62 = vpop.f32.mrb[23].mxu0 }
 0x6e1   : > { %1276 = vst.msk [vmem:[%s1269_s17 + $0x30] sm:$0xff] %vm38_vm0, %v1260_v62 }

// kernel: tpu_custom_call.1
= control target key start
LH: loop header
LB: loop body
LE: loop exit
PB: predicated region body
PF: predicated region fallthrough
CT: control target
= control target key end

     0   :  { %v1848_v3 = vmov 0.0   ;;  %vm38_vm0 = vcmask 261120   ;;  %v248_v29 = vlaneseq  ;;  %s2325_s1 = inlined_call_operand.vmem [shape: f32[32,160], index: 1, kind: input, shape index: {}]   ;;  %s2326_s2 = inlined_call_operand.vmem [shape: f32[32,32], index: 2, kind: input, shape index: {}]   ;;  %s2327_s3 = inlined_call_operand.vmem [shape: f32[2,64,32], index: 3, kind: output, shape index: {}]   ;;  %s2328_s0 = inlined_call_operand.vmem [shape: f32[2,64,32], index: 0, kind: input, shape index: {}]  }
   0x1   :  { %v31_v0 = vld [vmem:[%s2325_s1 + $0x8] sm:$0xff]  ;;  %v33_v1 = vld [vmem:[%s2325_s1 + $0x18] sm:$0xff]  ;;  %v30_v2 = vld [vmem:[%s2325_s1] sm:$0xff]  ;;  %151 = vmatprep.mubr.f32.mxu0 %v1848_v3  ;;  %199 = vmatprep.mubr.f32.mxu1 %v1848_v3 }
   0x2   :  { %v1618_v4 = vpack.c.bf16 %v33_v1, %v31_v0  ;;  %v32_v5 = vld [vmem:[%s2325_s1 + $0x10] sm:$0xff]  ;;  %v35_v6 = vld [vmem:[%s2325_s1 + $0x28] sm:$0xff]  ;;  %v37_v7 = vld [vmem:[%s2325_s1 + $0x38] sm:$0xff]  ;;  %v1973_v30 = vand.u32 127, %v248_v29 }
   0x3   :  { %v1620_v8 = vpack.c.bf16 %v32_v5, %v30_v2  ;;  %v1622_v9 = vpack.c.bf16 %v37_v7, %v35_v6  ;;  %v34_v10 = vld [vmem:[%s2325_s1 + $0x20] sm:$0xff]  ;;  %v36_v11 = vld [vmem:[%s2325_s1 + $0x30] sm:$0xff]  ;;  %v15_v15 = vld [vmem:[%s2328_s0 + $0x8] sm:$0xff] }
   0x4   :  { %1619 = vmatprep.subr.bf16.mxu0 %v1618_v4  ;;  %1730 = vmatprep.subr.bf16.mxu1 %v1618_v4  ;;  %v1624_v12 = vpack.c.bf16 %v36_v11, %v34_v10  ;;  %v14_v13 = vld [vmem:[%s2328_s0] sm:$0xff]  ;;  %v23_v16 = vld [vmem:[%s2328_s0 + $0x48] sm:$0xff]  ;;  %v16_v17 = vld [vmem:[%s2328_s0 + $0x10] sm:$0xff]  ;;  %vm250_vm1 = vcmp.lt.s32.totalorder %v1973_v30, 16 }
   0x5   :  { %1621 = vmatpush1.bf16.msra.mxu0 %v1620_v8  ;;  %1732 = vmatpush1.bf16.msra.mxu1 %v1620_v8  ;;  %v22_v14 = vld [vmem:[%s2328_s0 + $0x40] sm:$0xff]  ;;  %v24_v18 = vld [vmem:[%s2328_s0 + $0x50] sm:$0xff]  ;;  %v17_v19 = vld [vmem:[%s2328_s0 + $0x18] sm:$0xff] }
   0x6   :  { %1623 = vmatprep.subr.bf16.mxu0 %v1622_v9  ;;  %1731 = vmatprep.subr.bf16.mxu1 %v1622_v9  ;;  %v25_v20 = vld [vmem:[%s2328_s0 + $0x58] sm:$0xff]  ;;  %v18_v21 = vld [vmem:[%s2328_s0 + $0x20] sm:$0xff]  ;;  %v19_v23 = vld [vmem:[%s2328_s0 + $0x28] sm:$0xff] }
   0x7   :  { %v26_v22 = vld [vmem:[%s2328_s0 + $0x60] sm:$0xff]  ;;  %v27_v24 = vld [vmem:[%s2328_s0 + $0x68] sm:$0xff]  ;;  %v20_v25 = vld [vmem:[%s2328_s0 + $0x30] sm:$0xff] }
   0x8   :  { %v28_v26 = vld [vmem:[%s2328_s0 + $0x70] sm:$0xff]  ;;  %v21_v27 = vld [vmem:[%s2328_s0 + $0x38] sm:$0xff] }
   0x9   :  { %1625 = vmatpush1.bf16.msra.mxu0 %v1624_v12  ;;  %1733 = vmatpush1.bf16.msra.mxu1 %v1624_v12  ;;  %v29_v28 = vld [vmem:[%s2328_s0 + $0x78] sm:$0xff]  ;;  %s2152_s0 = smov 0  }
   0xc   :  { %1293 = vmatmul.mubr.msk.f32.vlgmr.msra.gmra.mrb[0].mxu0 %vm38_vm0, %v14_v13  ;;  %1301 = vmatmul.mubr.msk.f32.vlgmr.msra.gmra.mrb[0].mxu1 %vm38_vm0, %v22_v14 }
   0xd   :  { %157 = vmatprep.mubr.f32.mxu0 %v1848_v3  ;;  %205 = vmatprep.mubr.f32.mxu1 %v1848_v3 }
  0x10   :  { %1294 = vmatmul.mubr.msk.f32.gmra.mrb[2].mxu0 %vm38_vm0, %v15_v15  ;;  %1302 = vmatmul.mubr.msk.f32.gmra.mrb[2].mxu1 %vm38_vm0, %v23_v16 }
  0x11   :  { %163 = vmatprep.mubr.f32.mxu0 %v1848_v3  ;;  %211 = vmatprep.mubr.f32.mxu1 %v1848_v3 }
  0x14   :  { %1295 = vmatmul.mubr.msk.f32.gmra.mrb[4].mxu0 %vm38_vm0, %v16_v17  ;;  %1303 = vmatmul.mubr.msk.f32.gmra.mrb[4].mxu1 %vm38_vm0, %v24_v18 }
  0x15   :  { %169 = vmatprep.mubr.f32.mxu0 %v1848_v3  ;;  %217 = vmatprep.mubr.f32.mxu1 %v1848_v3 }
  0x18   :  { %1296 = vmatmul.mubr.msk.f32.gmra.mrb[6].mxu0 %vm38_vm0, %v17_v19  ;;  %1304 = vmatmul.mubr.msk.f32.gmra.mrb[6].mxu1 %vm38_vm0, %v25_v20 }
  0x19   :  { %175 = vmatprep.mubr.f32.mxu0 %v1848_v3  ;;  %223 = vmatprep.mubr.f32.mxu1 %v1848_v3 }
  0x1c   :  { %1297 = vmatmul.mubr.msk.f32.gmra.mrb[8].mxu0 %vm38_vm0, %v18_v21  ;;  %1305 = vmatmul.mubr.msk.f32.gmra.mrb[8].mxu1 %vm38_vm0, %v26_v22 }
  0x1d   :  { %181 = vmatprep.mubr.f32.mxu0 %v1848_v3  ;;  %229 = vmatprep.mubr.f32.mxu1 %v1848_v3 }
  0x20   :  { %1298 = vmatmul.mubr.msk.f32.gmra.mrb[10].mxu0 %vm38_vm0, %v19_v23  ;;  %1306 = vmatmul.mubr.msk.f32.gmra.mrb[10].mxu1 %vm38_vm0, %v27_v24 }
  0x21   :  { %187 = vmatprep.mubr.f32.mxu0 %v1848_v3  ;;  %235 = vmatprep.mubr.f32.mxu1 %v1848_v3 }
  0x24   :  { %1299 = vmatmul.mubr.msk.f32.gmra.mrb[12].mxu0 %vm38_vm0, %v20_v25  ;;  %1307 = vmatmul.mubr.msk.f32.gmra.mrb[12].mxu1 %vm38_vm0, %v28_v26 }
  0x25   :  { %193 = vmatprep.mubr.f32.mxu0 %v1848_v3  ;;  %241 = vmatprep.mubr.f32.mxu1 %v1848_v3 }
  0x28   :  { %1300 = vmatmul.mubr.msk.f32.gmra.mrb[14].mxu0 %vm38_vm0, %v21_v27  ;;  %1308 = vmatmul.mubr.msk.f32.gmra.mrb[14].mxu1 %vm38_vm0, %v29_v28 }
  0xdf   :  { %v153_v31 = vpop.f32.mrb[0].mxu0  ;;  %v201_v32 = vpop.f32.mrb[0].mxu1 }
  0xe0   :  { %v155_v33 = vpop.f32.mrb[1].mxu0  ;;  %v1978_v34 = vsel %vm250_vm1, %v153_v31, -1e+30  ;;  %v203_v35 = vpop.f32.mrb[1].mxu1  ;;  %v1985_v36 = vsel %vm250_vm1, %v201_v32, -1e+30 }
  0xe1   :  { %427 = vst.msk [vmem:[#allocation3] sm:$0xff] %vm38_vm0, %v155_v33  ;;  %267 = vmax.xlane.f32.xlu0 %v1978_v34  ;;  %435 = vst.msk [vmem:[#allocation3 + $0x40] sm:$0xff] %vm38_vm0, %v203_v35 }
  0xe3   :  { %v207_v37 = vpop.f32.mrb[2].mxu1  ;;  %v159_v38 = vpop.f32.mrb[2].mxu0 }
  0xe4   :  { %v1989_v39 = vsel %vm250_vm1, %v207_v37, -1e+30  ;;  %v161_v40 = vpop.f32.mrb[3].mxu0  ;;  %v209_v41 = vpop.f32.mrb[3].mxu1  ;;  %v1997_v42 = vsel %vm250_vm1, %v159_v38, -1e+30 }
  0xe5   :  { %285 = vmax.xlane.f32.xlu1 %v1989_v39  ;;  %283 = vmax.xlane.f32.xlu0 %v1985_v36  ;;  %428 = vst.msk [vmem:[#allocation3 + $0x8] sm:$0xff] %vm38_vm0, %v161_v40  ;;  %436 = vst.msk [vmem:[#allocation3 + $0x48] sm:$0xff] %vm38_vm0, %v209_v41 }
  0xe7   :  { %v165_v43 = vpop.f32.mrb[4].mxu0  ;;  %v213_v44 = vpop.f32.mrb[4].mxu1 }
  0xe8   :  { %v2001_v45 = vsel %vm250_vm1, %v165_v43, -1e+30  ;;  %v167_v46 = vpop.f32.mrb[5].mxu0  ;;  %v215_v47 = vpop.f32.mrb[5].mxu1  ;;  %v2009_v48 = vsel %vm250_vm1, %v213_v44, -1e+30 }
  0xe9   :  { %269 = vmax.xlane.f32.xlu0 %v1997_v42  ;;  %271 = vmax.xlane.f32.xlu1 %v2001_v45  ;;  %429 = vst.msk [vmem:[#allocation3 + $0x10] sm:$0xff] %vm38_vm0, %v167_v46  ;;  %437 = vst.msk [vmem:[#allocation3 + $0x50] sm:$0xff] %vm38_vm0, %v215_v47 }
  0xeb   :  { %v171_v49 = vpop.f32.mrb[6].mxu0  ;;  %v219_v50 = vpop.f32.mrb[6].mxu1 }
  0xec   :  { %v2013_v51 = vsel %vm250_vm1, %v171_v49, -1e+30  ;;  %v173_v52 = vpop.f32.mrb[7].mxu0  ;;  %v221_v53 = vpop.f32.mrb[7].mxu1  ;;  %v2021_v54 = vsel %vm250_vm1, %v219_v50, -1e+30 }
  0xed   :  { %287 = vmax.xlane.f32.xlu0 %v2009_v48  ;;  %273 = vmax.xlane.f32.xlu1 %v2013_v51  ;;  %430 = vst.msk [vmem:[#allocation3 + $0x18] sm:$0xff] %vm38_vm0, %v173_v52  ;;  %438 = vst.msk [vmem:[#allocation3 + $0x58] sm:$0xff] %vm38_vm0, %v221_v53 }
  0xef   :  { %v177_v55 = vpop.f32.mrb[8].mxu0  ;;  %v225_v56 = vpop.f32.mrb[8].mxu1 }
  0xf0   :  { %v2025_v57 = vsel %vm250_vm1, %v177_v55, -1e+30  ;;  %v179_v58 = vpop.f32.mrb[9].mxu0  ;;  %v227_v59 = vpop.f32.mrb[9].mxu1  ;;  %v2033_v60 = vsel %vm250_vm1, %v225_v56, -1e+30 }
  0xf1   :  { %289 = vmax.xlane.f32.xlu1 %v2021_v54  ;;  %275 = vmax.xlane.f32.xlu0 %v2025_v57  ;;  %431 = vst.msk [vmem:[#allocation3 + $0x20] sm:$0xff] %vm38_vm0, %v179_v58  ;;  %439 = vst.msk [vmem:[#allocation3 + $0x60] sm:$0xff] %vm38_vm0, %v227_v59 }
  0xf3   :  { %v183_v61 = vpop.f32.mrb[10].mxu0  ;;  %v231_v62 = vpop.f32.mrb[10].mxu1 }
  0xf4   :  { %v2037_v63 = vsel %vm250_vm1, %v183_v61, -1e+30  ;;  %v185_v0 = vpop.f32.mrb[11].mxu0  ;;  %v233_v1 = vpop.f32.mrb[11].mxu1  ;;  %v2045_v2 = vsel %vm250_vm1, %v231_v62, -1e+30 }
  0xf5   :  { %291 = vmax.xlane.f32.xlu0 %v2033_v60  ;;  %277 = vmax.xlane.f32.xlu1 %v2037_v63  ;;  %432 = vst.msk [vmem:[#allocation3 + $0x28] sm:$0xff] %vm38_vm0, %v185_v0  ;;  %440 = vst.msk [vmem:[#allocation3 + $0x68] sm:$0xff] %vm38_vm0, %v233_v1 }
  0xf7   :  { %v189_v3 = vpop.f32.mrb[12].mxu0  ;;  %v237_v4 = vpop.f32.mrb[12].mxu1 }
  0xf8   :  { %v2049_v5 = vsel %vm250_vm1, %v189_v3, -1e+30  ;;  %v191_v6 = vpop.f32.mrb[13].mxu0  ;;  %v239_v7 = vpop.f32.mrb[13].mxu1  ;;  %v2057_v8 = vsel %vm250_vm1, %v237_v4, -1e+30 }
  0xf9   :  { %293 = vmax.xlane.f32.xlu1 %v2045_v2  ;;  %279 = vmax.xlane.f32.xlu0 %v2049_v5  ;;  %433 = vst.msk [vmem:[#allocation3 + $0x30] sm:$0xff] %vm38_vm0, %v191_v6  ;;  %441 = vst.msk [vmem:[#allocation3 + $0x70] sm:$0xff] %vm38_vm0, %v239_v7 }
  0xfb   :  { %v195_v9 = vpop.f32.mrb[14].mxu0  ;;  %v243_v10 = vpop.f32.mrb[14].mxu1 }
  0xfc   :  { %v2061_v11 = vsel %vm250_vm1, %v195_v9, -1e+30  ;;  %v197_v12 = vpop.f32.mrb[15].mxu0  ;;  %v245_v13 = vpop.f32.mrb[15].mxu1  ;;  %v2069_v14 = vsel %vm250_vm1, %v243_v10, -1e+30 }
  0xfd   :  { %295 = vmax.xlane.f32.xlu0 %v2057_v8  ;;  %281 = vmax.xlane.f32.xlu1 %v2061_v11  ;;  %434 = vst.msk [vmem:[#allocation3 + $0x38] sm:$0xff] %vm38_vm0, %v197_v12  ;;  %442 = vst.msk [vmem:[#allocation3 + $0x78] sm:$0xff] %vm38_vm0, %v245_v13 }
 0x101   :  { %297 = vmax.xlane.f32.xlu1 %v2069_v14 }
 0x16e   :  { %v268_v15 = vpop.xlane.xlu0 %267 }
 0x16f   :  { %v299_v16 = vsub.f32 %v1978_v34, %v268_v15 }
 0x171   :  { %v315_v17 = vmul.f32 1.442695, %v299_v16 }
 0x172   :  { %v286_v18 = vpop.xlane.xlu1 %285  ;;  %v284_v19 = vpop.xlane.xlu0 %283 }
 0x173   :  { %1744 = vpow2.f32 %v315_v17  ;;  %v307_v20 = vsub.f32 %v1985_v36, %v284_v19  ;;  %v308_v22 = vsub.f32 %v1989_v39, %v286_v18 }
 0x175   :  { %v331_v21 = vmul.f32 1.442695, %v307_v20  ;;  %v333_v29 = vmul.f32 1.442695, %v308_v22 }
 0x176   :  { %v270_v23 = vpop.xlane.xlu0 %269  ;;  %v272_v24 = vpop.xlane.xlu1 %271 }
 0x177   :  { %v300_v25 = vsub.f32 %v1997_v42, %v270_v23  ;;  %v301_v26 = vsub.f32 %v2001_v45, %v272_v24  ;;  %1746 = vpow2.f32 %v331_v21 }
 0x179   :  { %v317_v27 = vmul.f32 1.442695, %v300_v25  ;;  %v319_v28 = vmul.f32 1.442695, %v301_v26 }
 0x17a   :  { %v288_v31 = vpop.xlane.xlu0 %287  ;;  %v274_v32 = vpop.xlane.xlu1 %273 }
 0x17b   :  { %1748 = vpow2.f32 %v317_v27  ;;  %v309_v33 = vsub.f32 %v2009_v48, %v288_v31  ;;  %v302_v34 = vsub.f32 %v2013_v51, %v274_v32 }
 0x17c   :  { %1750 = vpow2.f32 %v319_v28 }
 0x17d   :  { %v2079_v35 = vpop.eup %1744  ;;  %v335_v36 = vmul.f32 1.442695, %v309_v33  ;;  %1752 = vpow2.f32 %v333_v29  ;;  %v321_v39 = vmul.f32 1.442695, %v302_v34 }
 0x17e   :  { %v290_v37 = vpop.xlane.xlu1 %289  ;;  %v276_v38 = vpop.xlane.xlu0 %275  ;;  %347 = vadd.xlane.f32.xlu0 %v2079_v35 }
 0x17f   :  { %1754 = vpow2.f32 %v335_v36  ;;  %v310_v40 = vsub.f32 %v2021_v54, %v290_v37  ;;  %v303_v41 = vsub.f32 %v2025_v57, %v276_v38 }
 0x180   :  { %1756 = vpow2.f32 %v321_v39 }
 0x181   :  { %v323_v42 = vmul.f32 1.442695, %v303_v41  ;;  %v2084_v43 = vpop.eup %1746  ;;  %v337_v44 = vmul.f32 1.442695, %v310_v40 }
 0x182   :  { %v292_v45 = vpop.xlane.xlu0 %291  ;;  %v278_v46 = vpop.xlane.xlu1 %277  ;;  %363 = vadd.xlane.f32.xlu0 %v2084_v43 }
 0x183   :  { %v311_v47 = vsub.f32 %v2033_v60, %v292_v45  ;;  %v304_v48 = vsub.f32 %v2037_v63, %v278_v46  ;;  %1758 = vpow2.f32 %v323_v42 }
 0x184   :  { %1760 = vpow2.f32 %v337_v44 }
 0x185   :  { %v2089_v49 = vpop.eup %1748  ;;  %v339_v50 = vmul.f32 1.442695, %v311_v47  ;;  %v325_v54 = vmul.f32 1.442695, %v304_v48 }
 0x186   :  { %v2091_v51 = vpop.eup %1750  ;;  %v294_v52 = vpop.xlane.xlu1 %293  ;;  %349 = vadd.xlane.f32.xlu1 %v2089_v49 }
 0x187   :  { %v280_v53 = vpop.xlane.xlu0 %279  ;;  %1762 = vpow2.f32 %v339_v50  ;;  %v312_v55 = vsub.f32 %v2045_v2, %v294_v52  ;;  %351 = vadd.xlane.f32.xlu0 %v2091_v51  ;;  %v2097_v57 = vpop.eup %1752 }
 0x188   :  { %v305_v56 = vsub.f32 %v2049_v5, %v280_v53  ;;  %1764 = vpow2.f32 %v325_v54 }
 0x189   :  { %v2099_v58 = vpop.eup %1754  ;;  %v341_v60 = vmul.f32 1.442695, %v312_v55 }
 0x18a   :  { %v327_v59 = vmul.f32 1.442695, %v305_v56  ;;  %365 = vadd.xlane.f32.xlu1 %v2097_v57  ;;  %v282_v62 = vpop.xlane.xlu1 %281  ;;  %v2105_v1 = vpop.eup %1756 }
 0x18b   :  { %v296_v61 = vpop.xlane.xlu0 %295  ;;  %367 = vadd.xlane.f32.xlu0 %v2099_v58  ;;  %v306_v0 = vsub.f32 %v2061_v11, %v282_v62 }
 0x18c   :  { %v313_v63 = vsub.f32 %v2057_v8, %v296_v61  ;;  %1766 = vpow2.f32 %v327_v59 }
 0x18d   :  { %v2107_v3 = vpop.eup %1758  ;;  %1768 = vpow2.f32 %v341_v60  ;;  %v329_v5 = vmul.f32 1.442695, %v306_v0 }
 0x18e   :  { %v343_v2 = vmul.f32 1.442695, %v313_v63  ;;  %353 = vadd.xlane.f32.xlu1 %v2105_v1  ;;  %v298_v4 = vpop.xlane.xlu1 %297  ;;  %v2112_v7 = vpop.eup %1760 }
 0x18f   :  { %355 = vadd.xlane.f32.xlu0 %v2107_v3  ;;  %v314_v6 = vsub.f32 %v2069_v14, %v298_v4 }
 0x190   :  { %1770 = vpow2.f32 %v343_v2 }
 0x191   :  { %v2114_v8 = vpop.eup %1762  ;;  %1772 = vpow2.f32 %v329_v5  ;;  %v345_v9 = vmul.f32 1.442695, %v314_v6 }
 0x192   :  { %369 = vadd.xlane.f32.xlu1 %v2112_v7  ;;  %v2118_v10 = vpop.eup %1764 }
 0x193   :  { %371 = vadd.xlane.f32.xlu0 %v2114_v8  ;;  %1774 = vpow2.f32 %v345_v9 }
 0x196   :  { %v2120_v11 = vpop.eup %1766  ;;  %357 = vadd.xlane.f32.xlu1 %v2118_v10 }
 0x197   :  { %359 = vadd.xlane.f32.xlu0 %v2120_v11  ;;  %v2124_v12 = vpop.eup %1768 }
 0x19a   :  { %v2126_v13 = vpop.eup %1770  ;;  %373 = vadd.xlane.f32.xlu1 %v2124_v12 }
 0x19b   :  { %375 = vadd.xlane.f32.xlu0 %v2126_v13  ;;  %v2130_v14 = vpop.eup %1772 }
 0x19d   :  { %v2133_v15 = vpop.eup %1774 }
 0x19e   :  { %361 = vadd.xlane.f32.xlu1 %v2130_v14 }
 0x1a2   :  { %377 = vadd.xlane.f32.xlu1 %v2133_v15 }
 0x20b   :  { %v348_v16 = vpop.xlane.xlu0 %347 }
 0x20c   :  { %1776 = vrcp.f32 %v348_v16 }
 0x20f   :  { %v364_v17 = vpop.xlane.xlu0 %363 }
 0x210   :  { %1778 = vrcp.f32 %v364_v17 }
 0x213   :  { %v350_v18 = vpop.xlane.xlu1 %349 }
 0x214   :  { %v352_v19 = vpop.xlane.xlu0 %351  ;;  %1780 = vrcp.f32 %v350_v18 }
 0x215   :  { %1782 = vrcp.f32 %v352_v19 }
 0x216   :  { %v1777_v20 = vpop.eup %1776 }
 0x217   :  { %v395_v21 = vmul.f32 %v1777_v20, %v2079_v35  ;;  %v366_v22 = vpop.xlane.xlu1 %365 }
 0x218   :  { %v368_v23 = vpop.xlane.xlu0 %367  ;;  %1784 = vrcp.f32 %v366_v22 }
 0x219   :  { %411 = vst [vmem:[#allocation2] sm:$0xff] %v395_v21  ;;  %1786 = vrcp.f32 %v368_v23 }
 0x21a   :  { %v1779_v24 = vpop.eup %1778 }
 0x21b   :  { %v354_v25 = vpop.xlane.xlu1 %353  ;;  %v403_v26 = vmul.f32 %v1779_v24, %v2084_v43 }
 0x21c   :  { %v356_v27 = vpop.xlane.xlu0 %355  ;;  %1788 = vrcp.f32 %v354_v25 }
 0x21d   :  { %1790 = vrcp.f32 %v356_v27  ;;  %419 = vst [vmem:[#allocation2 + $0x40] sm:$0xff] %v403_v26 }
 0x21e   :  { %v1781_v28 = vpop.eup %1780 }
 0x21f   :  { %v1783_v29 = vpop.eup %1782  ;;  %v396_v31 = vmul.f32 %v1781_v28, %v2089_v49  ;;  %v370_v32 = vpop.xlane.xlu1 %369 }
 0x220   :  { %v397_v33 = vmul.f32 %v1783_v29, %v2091_v51  ;;  %v372_v34 = vpop.xlane.xlu0 %371  ;;  %1792 = vrcp.f32 %v370_v32 }
 0x221   :  { %412 = vst [vmem:[#allocation2 + $0x8] sm:$0xff] %v396_v31  ;;  %1794 = vrcp.f32 %v372_v34 }
 0x222   :  { %v1785_v35 = vpop.eup %1784  ;;  %413 = vst [vmem:[#allocation2 + $0x10] sm:$0xff] %v397_v33 }
 0x223   :  { %v1787_v36 = vpop.eup %1786  ;;  %v404_v37 = vmul.f32 %v1785_v35, %v2097_v57  ;;  %v358_v38 = vpop.xlane.xlu1 %357 }
 0x224   :  { %v405_v39 = vmul.f32 %v1787_v36, %v2099_v58  ;;  %v360_v40 = vpop.xlane.xlu0 %359  ;;  %1796 = vrcp.f32 %v358_v38 }
 0x225   :  { %420 = vst [vmem:[#allocation2 + $0x48] sm:$0xff] %v404_v37  ;;  %1798 = vrcp.f32 %v360_v40 }
 0x226   :  { %v1789_v41 = vpop.eup %1788  ;;  %421 = vst [vmem:[#allocation2 + $0x50] sm:$0xff] %v405_v39 }
 0x227   :  { %v1791_v42 = vpop.eup %1790  ;;  %v398_v43 = vmul.f32 %v1789_v41, %v2105_v1  ;;  %v374_v44 = vpop.xlane.xlu1 %373 }
 0x228   :  { %v399_v45 = vmul.f32 %v1791_v42, %v2107_v3  ;;  %v376_v46 = vpop.xlane.xlu0 %375  ;;  %1800 = vrcp.f32 %v374_v44 }
 0x229   :  { %414 = vst [vmem:[#allocation2 + $0x18] sm:$0xff] %v398_v43  ;;  %1802 = vrcp.f32 %v376_v46 }
 0x22a   :  { %v1793_v47 = vpop.eup %1792  ;;  %415 = vst [vmem:[#allocation2 + $0x20] sm:$0xff] %v399_v45 }
 0x22b   :  { %v1795_v48 = vpop.eup %1794  ;;  %v406_v49 = vmul.f32 %v1793_v47, %v2112_v7  ;;  %v362_v50 = vpop.xlane.xlu1 %361 }
 0x22c   :  { %v407_v51 = vmul.f32 %v1795_v48, %v2114_v8  ;;  %1804 = vrcp.f32 %v362_v50 }
 0x22d   :  { %422 = vst [vmem:[#allocation2 + $0x58] sm:$0xff] %v406_v49 }
 0x22e   :  { %v1797_v52 = vpop.eup %1796  ;;  %423 = vst [vmem:[#allocation2 + $0x60] sm:$0xff] %v407_v51 }
 0x22f   :  { %v1799_v53 = vpop.eup %1798  ;;  %v400_v54 = vmul.f32 %v1797_v52, %v2118_v10  ;;  %v378_v55 = vpop.xlane.xlu1 %377 }
 0x230   :  { %v401_v56 = vmul.f32 %v1799_v53, %v2120_v11  ;;  %1806 = vrcp.f32 %v378_v55 }
 0x231   :  { %416 = vst [vmem:[#allocation2 + $0x28] sm:$0xff] %v400_v54 }
 0x232   :  { %v1801_v57 = vpop.eup %1800  ;;  %417 = vst [vmem:[#allocation2 + $0x30] sm:$0xff] %v401_v56 }
 0x233   :  { %v1803_v58 = vpop.eup %1802  ;;  %v408_v59 = vmul.f32 %v1801_v57, %v2124_v12 }
 0x234   :  { %v409_v60 = vmul.f32 %v1803_v58, %v2126_v13 }
 0x235   :  { %424 = vst [vmem:[#allocation2 + $0x68] sm:$0xff] %v408_v59 }
 0x236   :  { %v1805_v61 = vpop.eup %1804  ;;  %425 = vst [vmem:[#allocation2 + $0x70] sm:$0xff] %v409_v60 }
 0x237   :  { %v402_v62 = vmul.f32 %v1805_v61, %v2130_v14 }
 0x239   :  { %418 = vst [vmem:[#allocation2 + $0x38] sm:$0xff] %v402_v62 }
 0x23a   :  { %v1807_v63 = vpop.eup %1806 }
 0x23b   :  { %v410_v0 = vmul.f32 %v1807_v63, %v2133_v15 }
 0x23d   :  { %426 = vst [vmem:[#allocation2 + $0x78] sm:$0xff] %v410_v0 }
 0x23e LB: > { %s2158_s1 = sshll.u32 %s1846_s0, 6  ;;  %v694_v21 = vld [vmem:[%s2326_s2] sm:$0xff]  ;;  %v695_v22 = vld [vmem:[%s2326_s2 + $0x8] sm:$0xff]  ;;  %v696_v23 = vld [vmem:[%s2326_s2 + $0x10] sm:$0xff]  ;;  %vm500_vm2 = vcmask 523264   ;;  %s448_s0 = sadd.s32 1, %s1846_s0   ;;  %s1846_s0 = sphi %s2152_s0, %s448_s0  }
 0x23f   : > { %s2161_s5 = scalar_lea.vmem [#allocation2], %s2158_s1  ;;  %s459_s6 = scalar_lea.vmem [#allocation3], %s2158_s1  ;;  %v1642_v24 = vpack.c.bf16 %v695_v22, %v694_v21  ;;  %v697_v25 = vld [vmem:[%s2326_s2 + $0x18] sm:$0xff]  ;;  %vm2228_vm3 = vmpackc.low %vm38_vm0, %vm38_vm0 }
 0x240   : > { %v2166_v3 = vld [vmem:[%s459_s6] sm:$0xff]  ;;  %v2168_v4 = vld [vmem:[%s459_s6 + $0x8] sm:$0xff]  ;;  %v2170_v5 = vld [vmem:[%s459_s6 + $0x10] sm:$0xff]  ;;  %v1646_v26 = vpack.c.bf16 %v697_v25, %v696_v23  ;;  %s1269_s17 = scalar_lea.vmem %s2327_s3, %s2158_s1  ;;  %p445_p0 = scmp.ge.s32.totalorder %s448_s0, 2  }
 0x241   : > { %v2172_v6 = vld [vmem:[%s459_s6 + $0x18] sm:$0xff]  ;;  %v1626_v7 = vpack.c.bf16 %v2168_v4, %v2166_v3  ;;  %v2178_v9 = vld [vmem:[%s459_s6 + $0x20] sm:$0xff]  ;;  %v2180_v10 = vld [vmem:[%s459_s6 + $0x28] sm:$0xff]  ;;  %1643 = vmatprep.subr.bf16.mxu1 %v1642_v24 }
 0x242   : > { %v1630_v8 = vpack.c.bf16 %v2172_v6, %v2170_v5  ;;  %v1634_v12 = vpack.c.bf16 %v2180_v10, %v2178_v9  ;;  %v2185_v13 = vld [vmem:[%s459_s6 + $0x30] sm:$0xff]  ;;  %v2187_v14 = vld [vmem:[%s459_s6 + $0x38] sm:$0xff]  ;;  %1645 = vmatpush3.bf16.msra.mxu1 %v1642_v24 }
 0x243   : > { %1627 = vmatprep.subr.bf16.mxu0 %v1626_v7  ;;  %v1638_v16 = vpack.c.bf16 %v2187_v14, %v2185_v13  ;;  %1647 = vmatprep.subr.bf16.mxu1 %v1646_v26 }
 0x244   : > { %v451_v1 = vld [vmem:[%s2161_s5] sm:$0xff]  ;;  %v452_v2 = vld [vmem:[%s2161_s5 + $0x8] sm:$0xff]  ;;  %v453_v11 = vld [vmem:[%s2161_s5 + $0x10] sm:$0xff]  ;;  %1629 = vmatpush3.bf16.msra.mxu0 %v1626_v7 }
 0x245   : > { %468 = vxpose.xlu0.b32.start [1/8] (short) %v451_v1, 128  ;;  %1631 = vmatprep.subr.bf16.mxu0 %v1630_v8  ;;  %v454_v15 = vld [vmem:[%s2161_s5 + $0x18] sm:$0xff]  ;;  %v455_v17 = vld [vmem:[%s2161_s5 + $0x20] sm:$0xff]  ;;  %v456_v18 = vld [vmem:[%s2161_s5 + $0x28] sm:$0xff] }
 0x246   : > { %v457_v19 = vld [vmem:[%s2161_s5 + $0x30] sm:$0xff]  ;;  %v458_v20 = vld [vmem:[%s2161_s5 + $0x38] sm:$0xff]  ;;  %1649 = vmatpush3.bf16.msra.mxu1 %v1646_v26 }
 0x248   : > { %1633 = vmatpush3.bf16.msra.mxu0 %v1630_v8 }
 0x249   : > { %469 = vxpose.xlu0.b32.cont [2/8] (short) %v452_v2, 128  ;;  %1635 = vmatprep.subr.bf16.mxu0 %v1634_v12 }
 0x24c   : > { %1637 = vmatpush3.bf16.msra.mxu0 %v1634_v12 }
 0x24d   : > { %470 = vxpose.xlu0.b32.cont [3/8] (short) %v453_v11, 128  ;;  %1639 = vmatprep.subr.bf16.mxu0 %v1638_v16 }
 0x250   : > { %1641 = vmatpush3.bf16.msra.mxu0 %v1638_v16 }
 0x251   : > { %471 = vxpose.xlu0.b32.cont [4/8] (short) %v454_v15, 128 }
 0x255   : > { %472 = vxpose.xlu0.b32.cont [5/8] (short) %v455_v17, 128 }
 0x259   : > { %473 = vxpose.xlu0.b32.cont [6/8] (short) %v456_v18, 128 }
 0x25d   : > { %474 = vxpose.xlu0.b32.cont [7/8] (short) %v457_v19, 128 }
 0x261   : > { %475 = vxpose.xlu0.b32.end [8/8] (short) %v458_v20, 128 }
 0x2c5   : > { %v484_v27 = vpop.trf.xlu0 }
 0x2c6   : > { %1474 = vmatprep.mubr.msk.f32.mxu0 %vm500_vm2, %v484_v27 }
 0x2c9   : > { %v485_v28 = vpop.trf.xlu0 }
 0x2ca   : > { %1475 = vmatmul.mubr.msk.f32.vlgmr.msra.gmra.mrb[0].mxu0 %vm500_vm2, %v485_v28 }
 0x2cd   : > { %v486_v29 = vpop.trf.xlu0 }
 0x2ce   : > { %1477 = vmatprep.mubr.msk.f32.mxu0 %vm500_vm2, %v486_v29 }
 0x2d1   : > { %v487_v31 = vpop.trf.xlu0 }
 0x2d2   : > { %1478 = vmatmul.mubr.msk.f32.gmra.mrb[2].mxu0 %vm500_vm2, %v487_v31 }
 0x2d5   : > { %v488_v32 = vpop.trf.xlu0 }
 0x2d6   : > { %1480 = vmatprep.mubr.msk.f32.mxu0 %vm500_vm2, %v488_v32 }
 0x2d9   : > { %v489_v33 = vpop.trf.xlu0 }
 0x2da   : > { %1481 = vmatmul.mubr.msk.f32.gmra.mrb[4].mxu0 %vm500_vm2, %v489_v33 }
 0x2dd   : > { %v490_v34 = vpop.trf.xlu0 }
 0x2de   : > { %1483 = vmatprep.mubr.msk.f32.mxu0 %vm500_vm2, %v490_v34 }
 0x2e1   : > { %v491_v35 = vpop.trf.xlu0 }
 0x2e2   : > { %1484 = vmatmul.mubr.msk.f32.gmra.mrb[6].mxu0 %vm500_vm2, %v491_v35 }
 0x2e5   : > { %v492_v36 = vpop.trf.xlu0 }
 0x2e6   : > { %1486 = vmatprep.mubr.msk.f32.mxu0 %vm500_vm2, %v492_v36 }
 0x2e9   : > { %v493_v37 = vpop.trf.xlu0 }
 0x2ea   : > { %1487 = vmatmul.mubr.msk.f32.gmra.mrb[8].mxu0 %vm500_vm2, %v493_v37 }
 0x2ed   : > { %v494_v38 = vpop.trf.xlu0 }
 0x2ee   : > { %1489 = vmatprep.mubr.msk.f32.mxu0 %vm500_vm2, %v494_v38 }
 0x2f1   : > { %v495_v39 = vpop.trf.xlu0 }
 0x2f2   : > { %1490 = vmatmul.mubr.msk.f32.gmra.mrb[10].mxu0 %vm500_vm2, %v495_v39 }
 0x2f5   : > { %v496_v40 = vpop.trf.xlu0 }
 0x2f6   : > { %1492 = vmatprep.mubr.msk.f32.mxu0 %vm500_vm2, %v496_v40 }
 0x2f9   : > { %v497_v41 = vpop.trf.xlu0 }
 0x2fa   : > { %1493 = vmatmul.mubr.msk.f32.gmra.mrb[12].mxu0 %vm500_vm2, %v497_v41 }
 0x2fd   : > { %v498_v42 = vpop.trf.xlu0 }
 0x2fe   : > { %1495 = vmatprep.mubr.msk.f32.mxu0 %vm500_vm2, %v498_v42 }
 0x301   : > { %v499_v43 = vpop.trf.xlu0 }
 0x302   : > { %1496 = vmatmul.mubr.msk.f32.gmra.mrb[14].mxu0 %vm500_vm2, %v499_v43 }
 0x39d   : > { %v1476_v44 = vpop.f32.mrb[0].mxu0 }
 0x39e   : > { %v892_v45 = vmul.f32 0.17677669, %v1476_v44  ;;  %v615_v46 = vpop.f32.mrb[1].mxu0 }
 0x39f   : > { %v891_v47 = vmul.f32 0.17677669, %v615_v46  ;;  %1506 = vmatprep.mubr.msk.f32.mxu1 %vm38_vm0, %v615_v46 }
 0x3a0   : > { %1507 = vmatmul.mubr.msk.f32.vlgmr.msra.gmra.mrb[0].mxu1 %vm38_vm0, %v1476_v44 }
 0x3a1   : > { %v1650_v49 = vpack.c.bf16 %v892_v45, %v891_v47 }
 0x3a3   : > { %1652 = vmatprep.subr.msk.bf16.mxu1 %vm2228_vm3, %v1650_v49 }
 0x3a4   : > { %1655 = vmatpush3.bf16.xpose.msk.msra.mxu1 %vm2228_vm3, %v1650_v49 }
 0x3a5   : > { %v1479_v50 = vpop.f32.mrb[2].mxu0 }
 0x3a6   : > { %v894_v51 = vmul.f32 0.17677669, %v1479_v50  ;;  %v625_v52 = vpop.f32.mrb[3].mxu0 }
 0x3a7   : > { %v893_v53 = vmul.f32 0.17677669, %v625_v52  ;;  %1509 = vmatprep.mubr.msk.f32.mxu1 %vm38_vm0, %v625_v52 }
 0x3a8   : > { %1510 = vmatmul.mubr.msk.f32.gmra.mrb[2].mxu1 %vm38_vm0, %v1479_v50 }
 0x3a9   : > { %v1656_v54 = vpack.c.bf16 %v894_v51, %v893_v53 }
 0x3ab   : > { %1658 = vmatprep.subr.msk.bf16.mxu1 %vm2228_vm3, %v1656_v54 }
 0x3ac   : > { %1661 = vmatpush3.bf16.xpose.msk.msra.mxu1 %vm2228_vm3, %v1656_v54 }
 0x3ad   : > { %v1482_v55 = vpop.f32.mrb[4].mxu0 }
 0x3ae   : > { %v896_v56 = vmul.f32 0.17677669, %v1482_v55  ;;  %v635_v57 = vpop.f32.mrb[5].mxu0 }
 0x3af   : > { %v895_v58 = vmul.f32 0.17677669, %v635_v57  ;;  %1512 = vmatprep.mubr.msk.f32.mxu1 %vm38_vm0, %v635_v57 }
 0x3b0   : > { %1513 = vmatmul.mubr.msk.f32.gmra.mrb[4].mxu1 %vm38_vm0, %v1482_v55 }
 0x3b1   : > { %v1662_v59 = vpack.c.bf16 %v896_v56, %v895_v58 }
 0x3b3   : > { %1664 = vmatprep.subr.msk.bf16.mxu1 %vm2228_vm3, %v1662_v59 }
 0x3b4   : > { %1667 = vmatpush3.bf16.xpose.msk.msra.mxu1 %vm2228_vm3, %v1662_v59 }
 0x3b5   : > { %v1485_v60 = vpop.f32.mrb[6].mxu0 }
 0x3b6   : > { %v898_v61 = vmul.f32 0.17677669, %v1485_v60  ;;  %v645_v62 = vpop.f32.mrb[7].mxu0 }
 0x3b7   : > { %v897_v63 = vmul.f32 0.17677669, %v645_v62  ;;  %1515 = vmatprep.mubr.msk.f32.mxu1 %vm38_vm0, %v645_v62 }
 0x3b8   : > { %1516 = vmatmul.mubr.msk.f32.gmra.mrb[6].mxu1 %vm38_vm0, %v1485_v60 }
 0x3b9   : > { %v1668_v0 = vpack.c.bf16 %v898_v61, %v897_v63 }
 0x3bb   : > { %1670 = vmatprep.subr.msk.bf16.mxu1 %vm2228_vm3, %v1668_v0 }
 0x3bc   : > { %1673 = vmatpush3.bf16.xpose.msk.msra.mxu1 %vm2228_vm3, %v1668_v0 }
 0x3bd   : > { %v1488_v1 = vpop.f32.mrb[8].mxu0 }
 0x3be   : > { %v900_v2 = vmul.f32 0.17677669, %v1488_v1  ;;  %v655_v7 = vpop.f32.mrb[9].mxu0 }
 0x3bf   : > { %v899_v8 = vmul.f32 0.17677669, %v655_v7  ;;  %1518 = vmatprep.mubr.msk.f32.mxu1 %vm38_vm0, %v655_v7 }
 0x3c0   : > { %1519 = vmatmul.mubr.msk.f32.gmra.mrb[8].mxu1 %vm38_vm0, %v1488_v1 }
 0x3c1   : > { %v1674_v11 = vpack.c.bf16 %v900_v2, %v899_v8 }
 0x3c3   : > { %1676 = vmatprep.subr.msk.bf16.mxu1 %vm2228_vm3, %v1674_v11 }
 0x3c4   : > { %1679 = vmatpush3.bf16.xpose.msk.msra.mxu1 %vm2228_vm3, %v1674_v11 }
 0x3c5   : > { %v1491_v12 = vpop.f32.mrb[10].mxu0 }
 0x3c6   : > { %v902_v15 = vmul.f32 0.17677669, %v1491_v12  ;;  %v665_v16 = vpop.f32.mrb[11].mxu0 }
 0x3c7   : > { %v901_v17 = vmul.f32 0.17677669, %v665_v16  ;;  %1521 = vmatprep.mubr.msk.f32.mxu1 %vm38_vm0, %v665_v16 }
 0x3c8   : > { %1522 = vmatmul.mubr.msk.f32.gmra.mrb[10].mxu1 %vm38_vm0, %v1491_v12 }
 0x3c9   : > { %v1680_v18 = vpack.c.bf16 %v902_v15, %v901_v17 }
 0x3cb   : > { %1682 = vmatprep.subr.msk.bf16.mxu1 %vm2228_vm3, %v1680_v18 }
 0x3cc   : > { %1685 = vmatpush3.bf16.xpose.msk.msra.mxu1 %vm2228_vm3, %v1680_v18 }
 0x3cd   : > { %v1494_v19 = vpop.f32.mrb[12].mxu0 }
 0x3ce   : > { %v904_v20 = vmul.f32 0.17677669, %v1494_v19  ;;  %v675_v21 = vpop.f32.mrb[13].mxu0 }
 0x3cf   : > { %v903_v22 = vmul.f32 0.17677669, %v675_v21  ;;  %1524 = vmatprep.mubr.msk.f32.mxu1 %vm38_vm0, %v675_v21 }
 0x3d0   : > { %1525 = vmatmul.mubr.msk.f32.gmra.mrb[12].mxu1 %vm38_vm0, %v1494_v19 }
 0x3d1   : > { %v1686_v23 = vpack.c.bf16 %v904_v20, %v903_v22 }
 0x3d3   : > { %1688 = vmatprep.subr.msk.bf16.mxu1 %vm2228_vm3, %v1686_v23 }
 0x3d4   : > { %1691 = vmatpush3.bf16.xpose.msk.msra.mxu1 %vm2228_vm3, %v1686_v23 }
 0x3d5   : > { %v1497_v24 = vpop.f32.mrb[14].mxu0 }
 0x3d6   : > { %v906_v25 = vmul.f32 0.17677669, %v1497_v24  ;;  %v685_v26 = vpop.f32.mrb[15].mxu0 }
 0x3d7   : > { %v905_v27 = vmul.f32 0.17677669, %v685_v26  ;;  %1527 = vmatprep.mubr.msk.f32.mxu1 %vm38_vm0, %v685_v26 }
 0x3d8   : > { %1528 = vmatmul.mubr.msk.f32.gmra.mrb[14].mxu1 %vm38_vm0, %v1497_v24 }
 0x3d9   : > { %v1692_v28 = vpack.c.bf16 %v906_v25, %v905_v27  ;;  %1562 = vmatprep.mubr.msk.f32.mxu1 %vm38_vm0, %v2166_v3 }
 0x3db   : > { %1694 = vmatprep.subr.msk.bf16.mxu1 %vm2228_vm3, %v1692_v28 }
 0x3dc   : > { %1697 = vmatpush3.bf16.xpose.msk.msra.mxu1 %vm2228_vm3, %v1692_v28 }
 0x3e3   : > { %1563 = vmatmul.mubr.msk.f32.vlgmr.msra.gmra.mrb[16].mxu1 %vm38_vm0, %v2168_v4 }
 0x3e4   : > { %1565 = vmatprep.mubr.msk.f32.mxu1 %vm38_vm0, %v2170_v5 }
 0x3e7   : > { %1566 = vmatmul.mubr.msk.f32.gmra.mrb[18].mxu1 %vm38_vm0, %v2172_v6 }
 0x3e8   : > { %1568 = vmatprep.mubr.msk.f32.mxu1 %vm38_vm0, %v2178_v9 }
 0x3eb   : > { %1569 = vmatmul.mubr.msk.f32.gmra.mrb[20].mxu1 %vm38_vm0, %v2180_v10 }
 0x3ec   : > { %1571 = vmatprep.mubr.msk.f32.mxu1 %vm38_vm0, %v2185_v13 }
 0x3ef   : > { %1572 = vmatmul.mubr.msk.f32.gmra.mrb[22].mxu1 %vm38_vm0, %v2187_v14 }
 0x473   : > { %v1508_v3 = vpop.f32.mrb[0].mxu1 }
 0x474   : > { %v812_v4 = vpop.f32.mrb[1].mxu1 }
 0x475   : > { %v1698_v29 = vpack.c.bf16 %v1508_v3, %v812_v4 }
 0x477   : > { %1699 = vmatprep.subr.bf16.mxu0 %v1698_v29 }
 0x478   : > { %1701 = vmatpush3.bf16.msra.mxu0 %v1698_v29 }
 0x47b   : > { %v1511_v5 = vpop.f32.mrb[2].mxu1 }
 0x47c   : > { %v822_v31 = vpop.f32.mrb[3].mxu1 }
 0x47d   : > { %v1702_v6 = vpack.c.bf16 %v1511_v5, %v822_v31 }
 0x47f   : > { %1703 = vmatprep.subr.bf16.mxu0 %v1702_v6 }
 0x480   : > { %1705 = vmatpush3.bf16.msra.mxu0 %v1702_v6 }
 0x483   : > { %v1514_v9 = vpop.f32.mrb[4].mxu1 }
 0x484   : > { %v832_v32 = vpop.f32.mrb[5].mxu1 }
 0x485   : > { %v1706_v33 = vpack.c.bf16 %v1514_v9, %v832_v32 }
 0x487   : > { %1707 = vmatprep.subr.bf16.mxu0 %v1706_v33 }
 0x488   : > { %1709 = vmatpush3.bf16.msra.mxu0 %v1706_v33 }
 0x48b   : > { %v1517_v10 = vpop.f32.mrb[6].mxu1 }
 0x48c   : > { %v842_v13 = vpop.f32.mrb[7].mxu1 }
 0x48d   : > { %v1710_v34 = vpack.c.bf16 %v1517_v10, %v842_v13 }
 0x48f   : > { %1711 = vmatprep.subr.bf16.mxu0 %v1710_v34 }
 0x490   : > { %1713 = vmatpush3.bf16.msra.mxu0 %v1710_v34 }
 0x493   : > { %v1520_v14 = vpop.f32.mrb[8].mxu1 }
 0x494   : > { %v852_v35 = vpop.f32.mrb[9].mxu1 }
 0x495   : > { %v1714_v36 = vpack.c.bf16 %v1520_v14, %v852_v35 }
 0x497   : > { %1715 = vmatprep.subr.bf16.mxu0 %v1714_v36 }
 0x498   : > { %1717 = vmatpush3.bf16.msra.mxu0 %v1714_v36 }
 0x49b   : > { %v1523_v37 = vpop.f32.mrb[10].mxu1 }
 0x49c   : > { %v862_v38 = vpop.f32.mrb[11].mxu1 }
 0x49d   : > { %v1718_v39 = vpack.c.bf16 %v1523_v37, %v862_v38 }
 0x49f   : > { %1719 = vmatprep.subr.bf16.mxu0 %v1718_v39 }
 0x4a0   : > { %1721 = vmatpush3.bf16.msra.mxu0 %v1718_v39 }
 0x4a3   : > { %v1526_v40 = vpop.f32.mrb[12].mxu1 }
 0x4a4   : > { %v872_v41 = vpop.f32.mrb[13].mxu1 }
 0x4a5   : > { %v1722_v42 = vpack.c.bf16 %v1526_v40, %v872_v41 }
 0x4a7   : > { %1723 = vmatprep.subr.bf16.mxu0 %v1722_v42 }
 0x4a8   : > { %1725 = vmatpush3.bf16.msra.mxu0 %v1722_v42 }
 0x4ab   : > { %v1529_v43 = vpop.f32.mrb[14].mxu1 }
 0x4ac   : > { %v882_v44 = vpop.f32.mrb[15].mxu1 }
 0x4ad   : > { %v1726_v45 = vpack.c.bf16 %v1529_v43, %v882_v44 }
 0x4af   : > { %1727 = vmatprep.subr.bf16.mxu0 %v1726_v45 }
 0x4b0   : > { %1729 = vmatpush3.bf16.msra.mxu0 %v1726_v45 }
 0x4b6   : > { %v1564_v46 = vpop.f32.mrb[16].mxu1 }
 0x4b7   : > { %v1045_v47 = vpop.f32.mrb[17].mxu1  ;;  %v1085_v48 = vsel %vm250_vm1, %v1564_v46, -1e+30 }
 0x4b8   : > { %1094 = vmax.xlane.f32.xlu1 %v1085_v48  ;;  %v1084_v50 = vsel %vm250_vm1, %v1045_v47, -1e+30 }
 0x4ba   : > { %v1567_v49 = vpop.f32.mrb[18].mxu1 }
 0x4bb   : > { %v1055_v51 = vpop.f32.mrb[19].mxu1  ;;  %v1087_v52 = vsel %vm250_vm1, %v1567_v49, -1e+30 }
 0x4bc   : > { %1092 = vmax.xlane.f32.xlu1 %v1084_v50  ;;  %v1086_v56 = vsel %vm250_vm1, %v1055_v51, -1e+30 }
 0x4be   : > { %v1570_v53 = vpop.f32.mrb[20].mxu1 }
 0x4bf   : > { %v1065_v54 = vpop.f32.mrb[21].mxu1  ;;  %v1089_v58 = vsel %vm250_vm1, %v1570_v53, -1e+30 }
 0x4c0   : > { %1098 = vmax.xlane.f32.xlu1 %v1087_v52  ;;  %v1088_v59 = vsel %vm250_vm1, %v1065_v54, -1e+30 }
 0x4c2   : > { %v1573_v55 = vpop.f32.mrb[22].mxu1 }
 0x4c3   : > { %v1075_v57 = vpop.f32.mrb[23].mxu1  ;;  %v1091_v61 = vsel %vm250_vm1, %v1573_v55, -1e+30 }
 0x4c4   : > { %1096 = vmax.xlane.f32.xlu1 %v1086_v56  ;;  %v1090_v60 = vsel %vm250_vm1, %v1075_v57, -1e+30 }
 0x4c8   : > { %1102 = vmax.xlane.f32.xlu1 %v1089_v58 }
 0x4cc   : > { %1100 = vmax.xlane.f32.xlu1 %v1088_v59 }
 0x4d0   : > { %1104 = vmax.xlane.f32.xlu1 %v1090_v60 }
 0x4d4   : > { %1106 = vmax.xlane.f32.xlu1 %v1091_v61 }
 0x545   : > { %v1095_v62 = vpop.xlane.xlu1 %1094 }
 0x546   : > { %v1109_v63 = vsub.f32 %v1085_v48, %v1095_v62 }
 0x548   : > { %v1118_v0 = vmul.f32 1.442695, %v1109_v63 }
 0x549   : > { %v1093_v1 = vpop.xlane.xlu1 %1092 }
 0x54a   : > { %1808 = vpow2.f32 %v1118_v0  ;;  %v1108_v2 = vsub.f32 %v1084_v50, %v1093_v1 }
 0x54c   : > { %v1116_v7 = vmul.f32 1.442695, %v1108_v2 }
 0x54d   : > { %v1099_v8 = vpop.xlane.xlu1 %1098 }
 0x54e   : > { %1810 = vpow2.f32 %v1116_v7  ;;  %v1111_v11 = vsub.f32 %v1087_v52, %v1099_v8 }
 0x550   : > { %v1122_v12 = vmul.f32 1.442695, %v1111_v11 }
 0x551   : > { %v1097_v15 = vpop.xlane.xlu1 %1096 }
 0x552   : > { %1812 = vpow2.f32 %v1122_v12  ;;  %v1110_v16 = vsub.f32 %v1086_v56, %v1097_v15 }
 0x554   : > { %v1809_v17 = vpop.eup %1808  ;;  %v1120_v18 = vmul.f32 1.442695, %v1110_v16 }
 0x555   : > { %v1103_v19 = vpop.xlane.xlu1 %1102  ;;  %1134 = vadd.xlane.f32.xlu1 %v1809_v17 }
 0x556   : > { %1814 = vpow2.f32 %v1120_v18  ;;  %v1113_v20 = vsub.f32 %v1089_v58, %v1103_v19 }
 0x558   : > { %v1811_v21 = vpop.eup %1810  ;;  %v1126_v22 = vmul.f32 1.442695, %v1113_v20 }
 0x559   : > { %1132 = vadd.xlane.f32.xlu0 %v1811_v21  ;;  %v1101_v23 = vpop.xlane.xlu1 %1100 }
 0x55a   : > { %1816 = vpow2.f32 %v1126_v22  ;;  %v1112_v24 = vsub.f32 %v1088_v59, %v1101_v23 }
 0x55c   : > { %v1813_v25 = vpop.eup %1812  ;;  %v1124_v26 = vmul.f32 1.442695, %v1112_v24 }
 0x55d   : > { %1138 = vadd.xlane.f32.xlu1 %v1813_v25  ;;  %v1105_v27 = vpop.xlane.xlu1 %1104 }
 0x55e   : > { %1818 = vpow2.f32 %v1124_v26  ;;  %v1114_v28 = vsub.f32 %v1090_v60, %v1105_v27 }
 0x560   : > { %v1815_v3 = vpop.eup %1814  ;;  %v1128_v4 = vmul.f32 1.442695, %v1114_v28 }
 0x561   : > { %1136 = vadd.xlane.f32.xlu1 %v1815_v3  ;;  %v1107_v29 = vpop.xlane.xlu1 %1106 }
 0x562   : > { %1820 = vpow2.f32 %v1128_v4  ;;  %v1115_v5 = vsub.f32 %v1091_v61, %v1107_v29 }
 0x564   : > { %v1817_v31 = vpop.eup %1816  ;;  %v1130_v6 = vmul.f32 1.442695, %v1115_v5 }
 0x565   : > { %1142 = vadd.xlane.f32.xlu1 %v1817_v31 }
 0x566   : > { %1822 = vpow2.f32 %v1130_v6 }
 0x568   : > { %v1819_v9 = vpop.eup %1818 }
 0x569   : > { %1140 = vadd.xlane.f32.xlu1 %v1819_v9 }
 0x56c   : > { %v1821_v32 = vpop.eup %1820 }
 0x56d   : > { %1144 = vadd.xlane.f32.xlu1 %v1821_v32 }
 0x570   : > { %v1823_v33 = vpop.eup %1822 }
 0x571   : > { %1146 = vadd.xlane.f32.xlu1 %v1823_v33 }
 0x5e2   : > { %v1135_v10 = vpop.xlane.xlu1 %1134 }
 0x5e3   : > { %1824 = vrcp.f32 %v1135_v10 }
 0x5e6   : > { %v1133_v13 = vpop.xlane.xlu0 %1132 }
 0x5e7   : > { %1826 = vrcp.f32 %v1133_v13 }
 0x5ea   : > { %v1139_v34 = vpop.xlane.xlu1 %1138 }
 0x5eb   : > { %1828 = vrcp.f32 %v1139_v34 }
 0x5ed   : > { %v1825_v35 = vpop.eup %1824 }
 0x5ee   : > { %v1137_v14 = vpop.xlane.xlu1 %1136  ;;  %v1157_v39 = vmul.f32 %v1825_v35, %v1809_v17 }
 0x5ef   : > { %1830 = vrcp.f32 %v1137_v14 }
 0x5f1   : > { %v1827_v36 = vpop.eup %1826 }
 0x5f2   : > { %v1143_v37 = vpop.xlane.xlu1 %1142  ;;  %v1156_v38 = vmul.f32 %v1827_v36, %v1811_v21 }
 0x5f3   : > { %1832 = vrcp.f32 %v1143_v37 }
 0x5f4   : > { %1606 = vmatprep.mubr.f32.mxu0 %v1156_v38 }
 0x5f5   : > { %1607 = vmatmul.mubr.f32.vlgmr.msra.gmra.mrb[16].mxu0 %v1157_v39  ;;  %v1829_v41 = vpop.eup %1828 }
 0x5f6   : > { %v1141_v40 = vpop.xlane.xlu1 %1140  ;;  %v1159_v45 = vmul.f32 %v1829_v41, %v1813_v25 }
 0x5f7   : > { %1834 = vrcp.f32 %v1141_v40 }
 0x5f9   : > { %v1831_v42 = vpop.eup %1830 }
 0x5fa   : > { %v1145_v43 = vpop.xlane.xlu1 %1144  ;;  %v1158_v44 = vmul.f32 %v1831_v42, %v1815_v3 }
 0x5fb   : > { %1836 = vrcp.f32 %v1145_v43 }
 0x5fc   : > { %1609 = vmatprep.mubr.f32.mxu0 %v1158_v44 }
 0x5fd   : > { %1610 = vmatmul.mubr.f32.gmra.mrb[18].mxu0 %v1159_v45  ;;  %v1833_v47 = vpop.eup %1832 }
 0x5fe   : > { %v1147_v46 = vpop.xlane.xlu1 %1146  ;;  %v1161_v50 = vmul.f32 %v1833_v47, %v1817_v31 }
 0x5ff   : > { %1838 = vrcp.f32 %v1147_v46 }
 0x601   : > { %v1835_v48 = vpop.eup %1834 }
 0x602   : > { %v1160_v49 = vmul.f32 %v1835_v48, %v1819_v9 }
 0x604   : > { %1612 = vmatprep.mubr.f32.mxu0 %v1160_v49 }
 0x605   : > { %v1837_v51 = vpop.eup %1836  ;;  %1613 = vmatmul.mubr.f32.gmra.mrb[20].mxu0 %v1161_v50 }
 0x606   : > { %v1162_v52 = vmul.f32 %v1837_v51, %v1821_v32 }
 0x608   : > { %1615 = vmatprep.mubr.f32.mxu0 %v1162_v52 }
 0x609   : > { %v1839_v53 = vpop.eup %1838 }
 0x60a   : > { %v1163_v54 = vmul.f32 %v1839_v53, %v1823_v33 }
 0x60c   : > { %1616 = vmatmul.mubr.f32.gmra.mrb[22].mxu0 %v1163_v54 }
 0x6c8   : > { %v1608_v55 = vpop.f32.mrb[16].mxu0 }
 0x6c9   : > { %1271 = vst.msk [vmem:[%s1269_s17 + $0x8] sm:$0xff] %vm38_vm0, %v1608_v55  ;;  %v1230_v56 = vpop.f32.mrb[17].mxu0 }
 0x6ca   : > { %1270 = vst.msk [vmem:[%s1269_s17] sm:$0xff] %vm38_vm0, %v1230_v56 }
 0x6d0   : > { %v1611_v57 = vpop.f32.mrb[18].mxu0 }
 0x6d1   : > { %1273 = vst.msk [vmem:[%s1269_s17 + $0x18] sm:$0xff] %vm38_vm0, %v1611_v57  ;;  %v1240_v58 = vpop.f32.mrb[19].mxu0 }
 0x6d2   : > { %1272 = vst.msk [vmem:[%s1269_s17 + $0x10] sm:$0xff] %vm38_vm0, %v1240_v58 }
 0x6d8   : > { %v1614_v59 = vpop.f32.mrb[20].mxu0 }
 0x6d9   : > { %1275 = vst.msk [vmem:[%s1269_s17 + $0x28] sm:$0xff] %vm38_vm0, %v1614_v59  ;;  %v1250_v60 = vpop.f32.mrb[21].mxu0 }
 0x6da   : > { %1274 = vst.msk [vmem:[%s1269_s17 + $0x20] sm:$0xff] %vm38_vm0, %v1250_v60 }
 0x6db   :  { %447 = sbr.rel (!%p445_p0) target bundleno = 574 (0x23e), region = 42 }
 0x6df   : > { %v1617_v61 = vpop.f32.mrb[22].mxu0 }
 0x6e0   : > { %1277 = vst.msk [vmem:[%s1269_s17 + $0x38] sm:$0xff] %vm38_vm0, %v1617_v61  ;;  %v1260_v62 = vpop.f32.mrb[23].mxu0 }
 0x6e1   : > { %1276 = vst.msk [vmem:[%s1269_s17 + $0x30] sm:$0xff] %vm38_vm0, %v1260_v62 }

</bundles_post_ra>
